<compile_context>
chip_gen: v7x
topology: tpu7x:2x2x1
jax: 0.10.0
libtpu: 0.0.40
codegen_flags: <defaults>
</compile_context>

<pallas_src>
import functools
import math

import jax
import jax.numpy as jnp
from jax.experimental import pallas as pl
from jax.experimental.pallas import tpu as pltpu


# -----------------------------------------------------------------------------
# Small helpers
# -----------------------------------------------------------------------------
def _round_up(x, m):
    return ((x + m - 1) // m) * m


def _largest_divisor_tile(total_rows, row_width, target_elems):
    """Largest divisor d of total_rows with d*row_width <= target_elems."""
    best = 1
    for d in range(1, total_rows + 1):
        if total_rows % d == 0 and d * row_width <= target_elems:
            best = d
    return best


def _gen_params():
    """(target tile rows*width, vmem_limit_bytes), generation-aware."""
    try:
        cap = int(pltpu.get_tpu_info().vmem_capacity_bytes)
    except Exception:
        cap = 0
    if cap > 96 * 1024 * 1024:            # v5e / v6e: 128 MiB VMEM per core
        return 8192, 64 * 1024 * 1024
    return 4096, 40 * 1024 * 1024          # v7x (64 MiB per TC) or unknown


# -----------------------------------------------------------------------------
# Kernel 1: conv1 (3x3, pad=1) + folded-BN + ReLU.
# Input : 2-padded activation (B, H+4, Wp+2, Cin), whole image resident per b.
# Output: padded layout (B, H+2, Wp, Cout) with the zero border ring written
#         by the kernel -> conv2 consumes it directly (no pad pass between).
# -----------------------------------------------------------------------------
def _conv1_kernel(x_ref, w_ref, scale_ref, shift_ref, o_ref, acc_ref, *, H, W, T):
    # x_ref : (H+4, Wp+2, Cin)  bf16, resident across the tile axis
    # w_ref : (3, 3*Cin, Cout)  bf16 taps grouped by ky (kx-major, then cin)
    # o_ref : (T, Wp, Cout)     bf16, rows [t*T, t*T+T) of the padded output
    t = pl.program_id(1)
    wp = o_ref.shape[1]
    cout = o_ref.shape[2]
    cin = x_ref.shape[2]

    r0 = pl.multiple_of(t * T, T)
    win = x_ref[pl.ds(r0, T + 2)]                       # (T+2, Wp+2, Cin)
    xcat = jnp.concatenate(
        [win[:, 0:wp, :], win[:, 1:wp + 1, :], win[:, 2:wp + 2, :]],
        axis=-1)                                        # (T+2, Wp, 3*Cin)

    for ky in range(3):                                 # static unroll, K = 3*Cin
        lhs = xcat[ky:ky + T].reshape(T * wp, 3 * cin)
        part = jnp.dot(lhs, w_ref[ky], preferred_element_type=jnp.float32)
        if ky == 0:
            acc_ref[...] = part                         # no explicit zero-init
        else:
            acc_ref[...] += part

    y = jnp.maximum(acc_ref[...] * scale_ref[...] + shift_ref[...], 0.0)
    y = y.reshape(T, wp, cout)
    # zero the padding ring (rows 0 / H+1, cols 0 and >= W+1) so the stored
    # activation is exactly conv2's zero-padded input.
    row = jax.lax.broadcasted_iota(jnp.int32, (T, wp, 1), 0) + t * T
    col = jax.lax.broadcasted_iota(jnp.int32, (T, wp, 1), 1)
    valid = (row >= 1) & (row <= H) & (col >= 1) & (col <= W)
    o_ref[...] = jnp.where(valid, y, 0.0).astype(o_ref.dtype)


def conv1_bn_relu(xp, w3, scale, shift, *, H, W, tile_rows, vmem_limit):
    """xp: (B, H+4, Wp+2, Cin) bf16 -> (B, H+2, Wp, Cout) bf16 (zero ring)."""
    B, Hp4, Wpp2, Cin = xp.shape
    Wp = Wpp2 - 2
    Cout = w3.shape[-1]
    Hp2 = H + 2
    T = tile_rows
    assert Hp2 % T == 0, (Hp2, T)
    return pl.pallas_call(
        functools.partial(_conv1_kernel, H=H, W=W, T=T),
        out_shape=jax.ShapeDtypeStruct((B, Hp2, Wp, Cout), jnp.bfloat16),
        grid=(B, Hp2 // T),
        in_specs=[
            pl.BlockSpec((None, Hp4, Wpp2, Cin), lambda b, t: (b, 0, 0, 0)),
            pl.BlockSpec((3, 3 * Cin, Cout), lambda b, t: (0, 0, 0)),
            pl.BlockSpec((1, Cout), lambda b, t: (0, 0)),
            pl.BlockSpec((1, Cout), lambda b, t: (0, 0)),
        ],
        out_specs=pl.BlockSpec((None, T, Wp, Cout), lambda b, t: (b, t, 0, 0)),
        scratch_shapes=[pltpu.VMEM((T * Wp, Cout), jnp.float32)],
        compiler_params=pltpu.CompilerParams(
            dimension_semantics=("parallel", "parallel"),
            vmem_limit_bytes=vmem_limit,
        ),
    )(xp, w3, scale, shift)


# -----------------------------------------------------------------------------
# Kernel 2: conv2 (3x3, pad=1) + folded-BN + ReLU with the global-average-pool
# fused in.  Only the (B, 128) pooled vector is written to HBM.
# -----------------------------------------------------------------------------
def _conv2_gap_kernel(h_ref, w_ref, scale_ref, shift_ref, gap_ref, acc_ref,
                      *, W, T, inv_hw):
    # h_ref  : (H+2, Wp, Cin) bf16 padded conv1 output, resident per batch
    # gap_ref: (1, Cout) f32 accumulator (resident across the tile axis)
    t = pl.program_id(1)
    cin = h_ref.shape[2]

    r0 = pl.multiple_of(t * T, T)
    win = h_ref[pl.ds(r0, T + 2)]                       # (T+2, Wp, Cin)
    xcat = jnp.concatenate(
        [win[:, 0:W, :], win[:, 1:W + 1, :], win[:, 2:W + 2, :]],
        axis=-1)                                        # (T+2, W, 3*Cin)

    for ky in range(3):
        lhs = xcat[ky:ky + T].reshape(T * W, 3 * cin)
        part = jnp.dot(lhs, w_ref[ky], preferred_element_type=jnp.float32)
        if ky == 0:
            acc_ref[...] = part
        else:
            acc_ref[...] += part

    y = jnp.maximum(acc_ref[...] * scale_ref[...] + shift_ref[...], 0.0)

    @pl.when(t == 0)
    def _():
        gap_ref[...] = jnp.zeros_like(gap_ref)

    gap_ref[...] += jnp.sum(y, axis=0, keepdims=True) * jnp.float32(inv_hw)


def conv2_bn_relu_gap(h_pad, w3, scale, shift, *, H, W, tile_rows, vmem_limit):
    """h_pad: (B, H+2, Wp, Cin) bf16 -> pooled (B, Cout) f32 (GAP fused)."""
    B, Hp2, Wp, Cin = h_pad.shape
    Cout = w3.shape[-1]
    T = tile_rows
    assert H % T == 0, (H, T)
    out = pl.pallas_call(
        functools.partial(_conv2_gap_kernel, W=W, T=T, inv_hw=1.0 / float(H * W)),
        out_shape=jax.ShapeDtypeStruct((B, 1, Cout), jnp.float32),
        grid=(B, H // T),
        in_specs=[
            pl.BlockSpec((None, Hp2, Wp, Cin), lambda b, t: (b, 0, 0, 0)),
            pl.BlockSpec((3, 3 * Cin, Cout), lambda b, t: (0, 0, 0)),
            pl.BlockSpec((1, Cout), lambda b, t: (0, 0)),
            pl.BlockSpec((1, Cout), lambda b, t: (0, 0)),
        ],
        out_specs=pl.BlockSpec((None, 1, Cout), lambda b, t: (b, 0, 0)),
        scratch_shapes=[pltpu.VMEM((T * W, Cout), jnp.float32)],
        compiler_params=pltpu.CompilerParams(
            # tile axis is a reduction into the resident GAP output -> arbitrary
            dimension_semantics=("parallel", "arbitrary"),
            vmem_limit_bytes=vmem_limit,
        ),
    )(h_pad, w3, scale, shift)
    return out.reshape(B, Cout)


# -----------------------------------------------------------------------------
# Params / folded BN / end-to-end forward
# -----------------------------------------------------------------------------
def fold_bn(conv_bias, gamma, beta, mean, var, eps=1e-5):
    scale = gamma / jnp.sqrt(var + eps)
    shift = beta + scale * (conv_bias - mean)
    return scale.reshape(1, -1), shift.reshape(1, -1)


def init_params(in_channels, key):
    ks = jax.random.split(key, 12)
    c1_in, c_mid = in_channels * 2, 128

    def nrm(k, shape, scl):
        return jax.random.normal(k, shape, jnp.float32) * scl

    p = {}
    # conv1 + bn1 (weights stored as (9, Cin, Cout) taps, t = ky*3 + kx)
    p["w1_taps"] = nrm(ks[0], (9, c1_in, c_mid), 1.0 / math.sqrt(9 * c1_in))
    b1 = nrm(ks[1], (c_mid,), 0.01)
    g1 = 1.0 + nrm(ks[2], (c_mid,), 0.05)
    be1 = nrm(ks[3], (c_mid,), 0.05)
    m1 = nrm(ks[4], (c_mid,), 0.05)
    v1 = 1.0 + jnp.abs(nrm(ks[5], (c_mid,), 0.05))
    p["scale1"], p["shift1"] = fold_bn(b1, g1, be1, m1, v1)
    # conv2 + bn2
    p["w2_taps"] = nrm(ks[6], (9, c_mid, c_mid), 1.0 / math.sqrt(9 * c_mid))
    b2 = nrm(ks[7], (c_mid,), 0.01)
    p["scale2"], p["shift2"] = fold_bn(
        b2, jnp.ones((c_mid,), jnp.float32), jnp.zeros((c_mid,), jnp.float32),
        jnp.zeros((c_mid,), jnp.float32), jnp.ones((c_mid,), jnp.float32))
    # fc head (tiny, f32)
    p["fw1"] = nrm(ks[8], (128, 64), 1.0 / math.sqrt(128))
    p["fb1"] = jnp.zeros((1, 64), jnp.float32)
    p["fw2"] = nrm(ks[9], (64, 32), 1.0 / math.sqrt(64))
    p["fb2"] = jnp.zeros((1, 32), jnp.float32)
    p["fw3"] = nrm(ks[10], (32, 4), 1.0 / math.sqrt(32))
    p["fb3"] = nrm(ks[11], (1, 4), 0.1)
    return p


@functools.partial(jax.jit, static_argnames=("target_rows",))
def registration_network(fixed_nchw, moving_nchw, params, target_rows=None):
    """Pallas implementation.  Inputs are NCHW (PyTorch convention)."""
    B, C, H, W = fixed_nchw.shape
    fixed = jnp.transpose(fixed_nchw, (0, 2, 3, 1))
    moving = jnp.transpose(moving_nchw, (0, 2, 3, 1))
    x = jnp.concatenate([fixed, moving], axis=-1).astype(jnp.bfloat16)  # (B,H,W,2C)
    cin1 = x.shape[-1]

    auto_rows, vmem_limit = _gen_params()
    rows = auto_rows if target_rows is None else target_rows

    # lane-friendly stored width (>= W+2, multiple of 8) -> layout-free reshapes
    Wp = _round_up(W + 2, 8)
    # single fused pad of the input (2-halo rows, 2 left cols, zeros to Wp+2)
    xp = jnp.pad(x, ((0, 0), (2, 2), (2, Wp - W), (0, 0)))      # (B,H+4,Wp+2,2C)

    # taps regrouped by ky: (3, 3*Cin, Cout), contraction order = (kx, cin)
    w1 = params["w1_taps"].reshape(3, 3 * cin1, -1).astype(jnp.bfloat16)
    w2 = params["w2_taps"].reshape(3, 3 * 128, 128).astype(jnp.bfloat16)

    t1 = _largest_divisor_tile(H + 2, Wp, rows)
    t2 = _largest_divisor_tile(H, W, rows)

    # NOTE: the whole per-batch padded activation stays resident in VMEM; for
    # very large spatial maps (> ~256x256 at 128 ch on v7x) switch the input
    # spec to manually DMA'd row windows.
    h_pad = conv1_bn_relu(xp, w1, params["scale1"], params["shift1"],
                          H=H, W=W, tile_rows=t1, vmem_limit=vmem_limit)
    g = conv2_bn_relu_gap(h_pad, w2, params["scale2"], params["shift2"],
                          H=H, W=W, tile_rows=t2, vmem_limit=vmem_limit)

    # Tiny FC head + tanh/sigmoid in plain JAX (avoids a masked (B,4) store and
    # an extra kernel launch).
    z = jnp.maximum(g @ params["fw1"] + params["fb1"], 0.0)
    z = jnp.maximum(z @ params["fw2"] + params["fb2"], 0.0)
    z = z @ params["fw3"] + params["fb3"]
    theta = jnp.tanh(z[:, 0]) * math.pi
    tx = jnp.tanh(z[:, 1]) * 0.5
    ty = jnp.tanh(z[:, 2]) * 0.5
    s = jax.nn.sigmoid(z[:, 3]) * 1.5 + 0.5
    return jnp.stack([theta, tx, ty, s], axis=1)


# -----------------------------------------------------------------------------
# Pure-JAX reference (same folded-BN + bf16-matmul / f32-accumulate policy)
# -----------------------------------------------------------------------------
def reference_forward(fixed_nchw, moving_nchw, p):
    fixed = jnp.transpose(fixed_nchw, (0, 2, 3, 1))
    moving = jnp.transpose(moving_nchw, (0, 2, 3, 1))
    x = jnp.concatenate([fixed, moving], axis=-1)

    def conv_bn_relu_ref(x, w_taps, scale, shift):
        cin, cout = w_taps.shape[1], w_taps.shape[2]
        w_hwio = w_taps.reshape(3, 3, cin, cout).astype(jnp.bfloat16)
        y = jax.lax.conv_general_dilated(
            x.astype(jnp.bfloat16), w_hwio, window_strides=(1, 1), padding="SAME",
            dimension_numbers=("NHWC", "HWIO", "NHWC"),
            preferred_element_type=jnp.float32)
        return jnp.maximum(y * scale + shift, 0.0)

    h = conv_bn_relu_ref(x, p["w1_taps"], p["scale1"], p["shift1"])
    h = conv_bn_relu_ref(h, p["w2_taps"], p["scale2"], p["shift2"])
    pooled = h.mean(axis=(1, 2))
    z = jnp.maximum(pooled @ p["fw1"] + p["fb1"], 0.0)
    z = jnp.maximum(z @ p["fw2"] + p["fb2"], 0.0)
    z = z @ p["fw3"] + p["fb3"]
    theta = jnp.tanh(z[:, 0]) * math.pi
    tx = jnp.tanh(z[:, 1]) * 0.5
    ty = jnp.tanh(z[:, 2]) * 0.5
    s = jax.nn.sigmoid(z[:, 3]) * 1.5 + 0.5
    return jnp.stack([theta, tx, ty, s], axis=1)


if __name__ == "__main__":
    B, C, H, W = 2, 4, 16, 16  # small shapes; module default in_channels=64 also works

    key = jax.random.PRNGKey(0)
    k_fixed, k_moving, k_params = jax.random.split(key, 3)
    fixed_features = jax.random.normal(k_fixed, (B, C, H, W), jnp.float32)
    moving_features = jax.random.normal(k_moving, (B, C, H, W), jnp.float32)
    params = init_params(C, k_params)

    # Small target_rows forces several row tiles per image: exercises the
    # resident-input windowing, border masking, and fused GAP accumulation.
    out_small = jax.block_until_ready(
        registration_network(fixed_features, moving_features, params,
                             target_rows=128))
    # Default (generation-aware) tiling.
    out_auto = jax.block_until_ready(
        registration_network(fixed_features, moving_features, params))

    assert out_small.shape == (B, 4), out_small.shape
    assert out_auto.shape == (B, 4), out_auto.shape

    ref = reference_forward(fixed_features, moving_features, params)
    ok = bool(jnp.allclose(out_small, ref, rtol=1e-2, atol=1e-2)) and \
         bool(jnp.allclose(out_auto, ref, rtol=1e-2, atol=1e-2))
    if not ok:
        raise AssertionError("Pallas output does not match JAX reference")

    print("KERNEL_OK")
</pallas_src>

<mosaic_0001>
module attributes {stable_mosaic.version = 11 : i64} {
  func.func @_conv2_gap_kernel(%arg0: i32, %arg1: i32, %arg2: memref<1x18x24x128xbf16, #tpu.memory_space<vmem>>, %arg3: memref<3x384x128xbf16, #tpu.memory_space<vmem>>, %arg4: memref<1x128xf32, #tpu.memory_space<vmem>>, %arg5: memref<1x128xf32, #tpu.memory_space<vmem>>, %arg6: memref<1x1x128xf32, #tpu.memory_space<vmem>>, %arg7: memref<128x128xf32, #tpu.memory_space<vmem>>) attributes {dimension_semantics = [#tpu.dimension_semantics<parallel>, #tpu.dimension_semantics<arbitrary>], iteration_bounds = array<i64: 2, 2>, scalar_prefetch = 0 : i64, scratch_operands = 1 : i64, tpu.core_type = #tpu.core_type<tc>, window_params = [{transform_indices = @transform_0, window_bounds = array<i64: 1, 18, 24, 128>}, {pipeline_mode = #tpu.pipeline_mode<synchronous>, transform_indices = @transform_1, window_bounds = array<i64: 3, 384, 128>}, {pipeline_mode = #tpu.pipeline_mode<synchronous>, transform_indices = @transform_2, window_bounds = array<i64: 1, 128>}, {pipeline_mode = #tpu.pipeline_mode<synchronous>, transform_indices = @transform_3, window_bounds = array<i64: 1, 128>}, {transform_indices = @transform_4, window_bounds = array<i64: 1, 1, 128>}]} {
    %c8_i32 = arith.constant 8 : i32
    %0 = arith.muli %arg1, %c8_i32 : i32
    %1 = tpu.assume_multiple %0, 8 : i32
    %c0 = arith.constant 0 : index
    %2 = arith.index_cast %1 : i32 to index
    %c0_0 = arith.constant 0 : index
    %c0_1 = arith.constant 0 : index
    %3 = vector.load %arg2[%c0, %2, %c0_0, %c0_1] : memref<1x18x24x128xbf16, #tpu.memory_space<vmem>>, vector<1x10x24x128xbf16>
    %4 = vector.shape_cast %3 : vector<1x10x24x128xbf16> to vector<10x24x128xbf16>
    %5 = vector.extract_strided_slice %4 {offsets = [0, 0, 0], sizes = [10, 16, 128], strides = [1, 1, 1]} : vector<10x24x128xbf16> to vector<10x16x128xbf16>
    %6 = vector.extract_strided_slice %4 {offsets = [0, 1, 0], sizes = [10, 16, 128], strides = [1, 1, 1]} : vector<10x24x128xbf16> to vector<10x16x128xbf16>
    %7 = vector.extract_strided_slice %4 {offsets = [0, 2, 0], sizes = [10, 16, 128], strides = [1, 1, 1]} : vector<10x24x128xbf16> to vector<10x16x128xbf16>
    %8 = tpu.concatenate %5, %6, %7 in 2 : vector<10x16x128xbf16>, vector<10x16x128xbf16>, vector<10x16x128xbf16> -> vector<10x16x384xbf16>
    %9 = vector.extract_strided_slice %8 {offsets = [0, 0, 0], sizes = [8, 16, 384], strides = [1, 1, 1]} : vector<10x16x384xbf16> to vector<8x16x384xbf16>
    %10 = vector.shape_cast %9 : vector<8x16x384xbf16> to vector<128x384xbf16>
    %c0_2 = arith.constant 0 : index
    %c0_3 = arith.constant 0 : index
    %c0_4 = arith.constant 0 : index
    %11 = vector.load %arg3[%c0_2, %c0_3, %c0_4] : memref<3x384x128xbf16, #tpu.memory_space<vmem>>, vector<1x384x128xbf16>
    %12 = vector.shape_cast %11 : vector<1x384x128xbf16> to vector<384x128xbf16>
    %cst = arith.constant dense<0.000000e+00> : vector<128x128xf32>
    %13 = tpu.matmul %10, %12, %cst {dimension_numbers = #tpu.dot_dimension_numbers<[1], [0], [0], [1], [0, 0, 1, 1], [], []>} : vector<128x384xbf16>, vector<384x128xbf16>, vector<128x128xf32> -> vector<128x128xf32>
    %c0_5 = arith.constant 0 : index
    %c0_6 = arith.constant 0 : index
    %14 = vector.load %arg7[%c0_5, %c0_6] : memref<128x128xf32, #tpu.memory_space<vmem>>, vector<128x128xf32>
    tpu.vector_store %arg7[%c0_5, %c0_6], %13 {strides = array<i32>} : memref<128x128xf32, #tpu.memory_space<vmem>>, vector<128x128xf32>,
    %15 = vector.extract_strided_slice %8 {offsets = [1, 0, 0], sizes = [8, 16, 384], strides = [1, 1, 1]} : vector<10x16x384xbf16> to vector<8x16x384xbf16>
    %16 = vector.shape_cast %15 : vector<8x16x384xbf16> to vector<128x384xbf16>
    %c1 = arith.constant 1 : index
    %c0_7 = arith.constant 0 : index
    %c0_8 = arith.constant 0 : index
    %17 = vector.load %arg3[%c1, %c0_7, %c0_8] : memref<3x384x128xbf16, #tpu.memory_space<vmem>>, vector<1x384x128xbf16>
    %18 = vector.shape_cast %17 : vector<1x384x128xbf16> to vector<384x128xbf16>
    %cst_9 = arith.constant dense<0.000000e+00> : vector<128x128xf32>
    %19 = tpu.matmul %16, %18, %cst_9 {dimension_numbers = #tpu.dot_dimension_numbers<[1], [0], [0], [1], [0, 0, 1, 1], [], []>} : vector<128x384xbf16>, vector<384x128xbf16>, vector<128x128xf32> -> vector<128x128xf32>
    %c0_10 = arith.constant 0 : index
    %c0_11 = arith.constant 0 : index
    %20 = vector.load %arg7[%c0_10, %c0_11] : memref<128x128xf32, #tpu.memory_space<vmem>>, vector<128x128xf32>
    %21 = arith.addf %20, %19 : vector<128x128xf32>
    %c0_12 = arith.constant 0 : index
    %c0_13 = arith.constant 0 : index
    %22 = vector.load %arg7[%c0_12, %c0_13] : memref<128x128xf32, #tpu.memory_space<vmem>>, vector<128x128xf32>
    tpu.vector_store %arg7[%c0_12, %c0_13], %21 {strides = array<i32>} : memref<128x128xf32, #tpu.memory_space<vmem>>, vector<128x128xf32>,
    %23 = vector.extract_strided_slice %8 {offsets = [2, 0, 0], sizes = [8, 16, 384], strides = [1, 1, 1]} : vector<10x16x384xbf16> to vector<8x16x384xbf16>
    %24 = vector.shape_cast %23 : vector<8x16x384xbf16> to vector<128x384xbf16>
    %c2 = arith.constant 2 : index
    %c0_14 = arith.constant 0 : index
    %c0_15 = arith.constant 0 : index
    %25 = vector.load %arg3[%c2, %c0_14, %c0_15] : memref<3x384x128xbf16, #tpu.memory_space<vmem>>, vector<1x384x128xbf16>
    %26 = vector.shape_cast %25 : vector<1x384x128xbf16> to vector<384x128xbf16>
    %cst_16 = arith.constant dense<0.000000e+00> : vector<128x128xf32>
    %27 = tpu.matmul %24, %26, %cst_16 {dimension_numbers = #tpu.dot_dimension_numbers<[1], [0], [0], [1], [0, 0, 1, 1], [], []>} : vector<128x384xbf16>, vector<384x128xbf16>, vector<128x128xf32> -> vector<128x128xf32>
    %c0_17 = arith.constant 0 : index
    %c0_18 = arith.constant 0 : index
    %28 = vector.load %arg7[%c0_17, %c0_18] : memref<128x128xf32, #tpu.memory_space<vmem>>, vector<128x128xf32>
    %29 = arith.addf %28, %27 : vector<128x128xf32>
    %c0_19 = arith.constant 0 : index
    %c0_20 = arith.constant 0 : index
    %30 = vector.load %arg7[%c0_19, %c0_20] : memref<128x128xf32, #tpu.memory_space<vmem>>, vector<128x128xf32>
    tpu.vector_store %arg7[%c0_19, %c0_20], %29 {strides = array<i32>} : memref<128x128xf32, #tpu.memory_space<vmem>>, vector<128x128xf32>,
    %c0_21 = arith.constant 0 : index
    %c0_22 = arith.constant 0 : index
    %31 = vector.load %arg7[%c0_21, %c0_22] : memref<128x128xf32, #tpu.memory_space<vmem>>, vector<128x128xf32>
    %c0_23 = arith.constant 0 : index
    %c0_24 = arith.constant 0 : index
    %32 = vector.load %arg4[%c0_23, %c0_24] : memref<1x128xf32, #tpu.memory_space<vmem>>, vector<1x128xf32>
    %33 = vector.broadcast %32 : vector<1x128xf32> to vector<128x128xf32>
    %34 = arith.mulf %31, %33 : vector<128x128xf32>
    %c0_25 = arith.constant 0 : index
    %c0_26 = arith.constant 0 : index
    %35 = vector.load %arg5[%c0_25, %c0_26] : memref<1x128xf32, #tpu.memory_space<vmem>>, vector<1x128xf32>
    %36 = vector.broadcast %35 : vector<1x128xf32> to vector<128x128xf32>
    %37 = arith.addf %34, %36 : vector<128x128xf32>
    %cst_27 = arith.constant 0.000000e+00 : f32
    %38 = vector.broadcast %cst_27 : f32 to vector<128x128xf32>
    %39 = arith.maximumf %37, %38 : vector<128x128xf32>
    %c0_i32 = arith.constant 0 : i32
    %40 = arith.cmpi eq, %arg1, %c0_i32 : i32
    %41 = arith.extui %40 : i1 to i32
    %c0_i32_28 = arith.constant 0 : i32
    %42 = arith.cmpi ne, %41, %c0_i32_28 : i32
    scf.if %42 {
      %cst_37 = arith.constant 0.000000e+00 : f32
      %53 = vector.broadcast %cst_37 : f32 to vector<1x128xf32>
      %c0_38 = arith.constant 0 : index
      %c0_39 = arith.constant 0 : index
      %c0_40 = arith.constant 0 : index
      %54 = vector.load %arg6[%c0_38, %c0_39, %c0_40] : memref<1x1x128xf32, #tpu.memory_space<vmem>>, vector<1x1x128xf32>
      %55 = vector.shape_cast %54 : vector<1x1x128xf32> to vector<1x128xf32>
      %56 = vector.shape_cast %53 : vector<1x128xf32> to vector<1x1x128xf32>
      tpu.vector_store %arg6[%c0_38, %c0_39, %c0_40], %56 {strides = array<i32>} : memref<1x1x128xf32, #tpu.memory_space<vmem>>, vector<1x1x128xf32>,
    } else {
    }
    %c0_29 = arith.constant 0 : index
    %c0_30 = arith.constant 0 : index
    %c0_31 = arith.constant 0 : index
    %43 = vector.load %arg6[%c0_29, %c0_30, %c0_31] : memref<1x1x128xf32, #tpu.memory_space<vmem>>, vector<1x1x128xf32>
    %44 = vector.shape_cast %43 : vector<1x1x128xf32> to vector<1x128xf32>
    %cst_32 = arith.constant dense<0.000000e+00> : vector<128xf32>
    %45 = vector.multi_reduction <add>, %39, %cst_32 [0] : vector<128x128xf32> to vector<128xf32>
    %46 = vector.shape_cast %45 : vector<128xf32> to vector<1x128xf32>
    %cst_33 = arith.constant 3.906250e-03 : f32
    %47 = vector.broadcast %cst_33 : f32 to vector<1x128xf32>
    %48 = arith.mulf %46, %47 : vector<1x128xf32>
    %49 = arith.addf %44, %48 : vector<1x128xf32>
    %c0_34 = arith.constant 0 : index
    %c0_35 = arith.constant 0 : index
    %c0_36 = arith.constant 0 : index
    %50 = vector.load %arg6[%c0_34, %c0_35, %c0_36] : memref<1x1x128xf32, #tpu.memory_space<vmem>>, vector<1x1x128xf32>
    %51 = vector.shape_cast %50 : vector<1x1x128xf32> to vector<1x128xf32>
    %52 = vector.shape_cast %49 : vector<1x128xf32> to vector<1x1x128xf32>
    tpu.vector_store %arg6[%c0_34, %c0_35, %c0_36], %52 {strides = array<i32>} : memref<1x1x128xf32, #tpu.memory_space<vmem>>, vector<1x1x128xf32>,
    return
  }
  func.func @transform_0(%arg0: i32, %arg1: i32) -> (i32, i32, i32, i32) {
    %c0_i32 = arith.constant 0 : i32
    %c0_i32_0 = arith.constant 0 : i32
    %c0_i32_1 = arith.constant 0 : i32
    %c0_i32_2 = arith.constant 0 : i32
    return %arg0, %c0_i32, %c0_i32_0, %c0_i32_1 : i32, i32, i32, i32
  }
  func.func @transform_1(%arg0: i32, %arg1: i32) -> (i32, i32, i32) {
    %c0_i32 = arith.constant 0 : i32
    %c0_i32_0 = arith.constant 0 : i32
    %c0_i32_1 = arith.constant 0 : i32
    %c0_i32_2 = arith.constant 0 : i32
    return %c0_i32, %c0_i32_0, %c0_i32_1 : i32, i32, i32
  }
  func.func @transform_2(%arg0: i32, %arg1: i32) -> (i32, i32) {
    %c0_i32 = arith.constant 0 : i32
    %c0_i32_0 = arith.constant 0 : i32
    %c0_i32_1 = arith.constant 0 : i32
    return %c0_i32, %c0_i32_0 : i32, i32
  }
  func.func @transform_3(%arg0: i32, %arg1: i32) -> (i32, i32) {
    %c0_i32 = arith.constant 0 : i32
    %c0_i32_0 = arith.constant 0 : i32
    %c0_i32_1 = arith.constant 0 : i32
    return %c0_i32, %c0_i32_0 : i32, i32
  }
  func.func @transform_4(%arg0: i32, %arg1: i32) -> (i32, i32, i32) {
    %c0_i32 = arith.constant 0 : i32
    %c0_i32_0 = arith.constant 0 : i32
    %c0_i32_1 = arith.constant 0 : i32
    return %arg0, %c0_i32, %c0_i32_0 : i32, i32, i32
  }
}

module attributes {stable_mosaic.version = 11 : i64} {
  func.func @_conv1_kernel(%arg0: i32, %arg1: i32, %arg2: memref<1x20x26x8xbf16, #tpu.memory_space<vmem>>, %arg3: memref<3x24x128xbf16, #tpu.memory_space<vmem>>, %arg4: memref<1x128xf32, #tpu.memory_space<vmem>>, %arg5: memref<1x128xf32, #tpu.memory_space<vmem>>, %arg6: memref<1x3x24x128xbf16, #tpu.memory_space<vmem>>, %arg7: memref<72x128xf32, #tpu.memory_space<vmem>>) attributes {dimension_semantics = [#tpu.dimension_semantics<parallel>, #tpu.dimension_semantics<parallel>], iteration_bounds = array<i64: 2, 6>, scalar_prefetch = 0 : i64, scratch_operands = 1 : i64, tpu.core_type = #tpu.core_type<tc>, window_params = [{transform_indices = @transform_0, window_bounds = array<i64: 1, 20, 26, 8>}, {pipeline_mode = #tpu.pipeline_mode<synchronous>, transform_indices = @transform_1, window_bounds = array<i64: 3, 24, 128>}, {pipeline_mode = #tpu.pipeline_mode<synchronous>, transform_indices = @transform_2, window_bounds = array<i64: 1, 128>}, {pipeline_mode = #tpu.pipeline_mode<synchronous>, transform_indices = @transform_3, window_bounds = array<i64: 1, 128>}, {transform_indices = @transform_4, window_bounds = array<i64: 1, 3, 24, 128>}]} {
    %c3_i32 = arith.constant 3 : i32
    %0 = arith.muli %arg1, %c3_i32 : i32
    %1 = tpu.assume_multiple %0, 3 : i32
    %c0 = arith.constant 0 : index
    %2 = arith.index_cast %1 : i32 to index
    %c0_0 = arith.constant 0 : index
    %c0_1 = arith.constant 0 : index
    %3 = vector.load %arg2[%c0, %2, %c0_0, %c0_1] : memref<1x20x26x8xbf16, #tpu.memory_space<vmem>>, vector<1x5x26x8xbf16>
    %4 = vector.shape_cast %3 : vector<1x5x26x8xbf16> to vector<5x26x8xbf16>
    %5 = vector.extract_strided_slice %4 {offsets = [0, 0, 0], sizes = [5, 24, 8], strides = [1, 1, 1]} : vector<5x26x8xbf16> to vector<5x24x8xbf16>
    %6 = vector.extract_strided_slice %4 {offsets = [0, 1, 0], sizes = [5, 24, 8], strides = [1, 1, 1]} : vector<5x26x8xbf16> to vector<5x24x8xbf16>
    %7 = vector.extract_strided_slice %4 {offsets = [0, 2, 0], sizes = [5, 24, 8], strides = [1, 1, 1]} : vector<5x26x8xbf16> to vector<5x24x8xbf16>
    %8 = tpu.concatenate %5, %6, %7 in 2 : vector<5x24x8xbf16>, vector<5x24x8xbf16>, vector<5x24x8xbf16> -> vector<5x24x24xbf16>
    %9 = vector.extract_strided_slice %8 {offsets = [0, 0, 0], sizes = [3, 24, 24], strides = [1, 1, 1]} : vector<5x24x24xbf16> to vector<3x24x24xbf16>
    %10 = vector.shape_cast %9 : vector<3x24x24xbf16> to vector<72x24xbf16>
    %c0_2 = arith.constant 0 : index
    %c0_3 = arith.constant 0 : index
    %c0_4 = arith.constant 0 : index
    %11 = vector.load %arg3[%c0_2, %c0_3, %c0_4] : memref<3x24x128xbf16, #tpu.memory_space<vmem>>, vector<1x24x128xbf16>
    %12 = vector.shape_cast %11 : vector<1x24x128xbf16> to vector<24x128xbf16>
    %cst = arith.constant dense<0.000000e+00> : vector<72x128xf32>
    %13 = tpu.matmul %10, %12, %cst {dimension_numbers = #tpu.dot_dimension_numbers<[1], [0], [0], [1], [0, 0, 1, 1], [], []>} : vector<72x24xbf16>, vector<24x128xbf16>, vector<72x128xf32> -> vector<72x128xf32>
    %c0_5 = arith.constant 0 : index
    %c0_6 = arith.constant 0 : index
    %14 = vector.load %arg7[%c0_5, %c0_6] : memref<72x128xf32, #tpu.memory_space<vmem>>, vector<72x128xf32>
    tpu.vector_store %arg7[%c0_5, %c0_6], %13 {strides = array<i32>} : memref<72x128xf32, #tpu.memory_space<vmem>>, vector<72x128xf32>,
    %15 = vector.extract_strided_slice %8 {offsets = [1, 0, 0], sizes = [3, 24, 24], strides = [1, 1, 1]} : vector<5x24x24xbf16> to vector<3x24x24xbf16>
    %16 = vector.shape_cast %15 : vector<3x24x24xbf16> to vector<72x24xbf16>
    %c1 = arith.constant 1 : index
    %c0_7 = arith.constant 0 : index
    %c0_8 = arith.constant 0 : index
    %17 = vector.load %arg3[%c1, %c0_7, %c0_8] : memref<3x24x128xbf16, #tpu.memory_space<vmem>>, vector<1x24x128xbf16>
    %18 = vector.shape_cast %17 : vector<1x24x128xbf16> to vector<24x128xbf16>
    %cst_9 = arith.constant dense<0.000000e+00> : vector<72x128xf32>
    %19 = tpu.matmul %16, %18, %cst_9 {dimension_numbers = #tpu.dot_dimension_numbers<[1], [0], [0], [1], [0, 0, 1, 1], [], []>} : vector<72x24xbf16>, vector<24x128xbf16>, vector<72x128xf32> -> vector<72x128xf32>
    %c0_10 = arith.constant 0 : index
    %c0_11 = arith.constant 0 : index
    %20 = vector.load %arg7[%c0_10, %c0_11] : memref<72x128xf32, #tpu.memory_space<vmem>>, vector<72x128xf32>
    %21 = arith.addf %20, %19 : vector<72x128xf32>
    %c0_12 = arith.constant 0 : index
    %c0_13 = arith.constant 0 : index
    %22 = vector.load %arg7[%c0_12, %c0_13] : memref<72x128xf32, #tpu.memory_space<vmem>>, vector<72x128xf32>
    tpu.vector_store %arg7[%c0_12, %c0_13], %21 {strides = array<i32>} : memref<72x128xf32, #tpu.memory_space<vmem>>, vector<72x128xf32>,
    %23 = vector.extract_strided_slice %8 {offsets = [2, 0, 0], sizes = [3, 24, 24], strides = [1, 1, 1]} : vector<5x24x24xbf16> to vector<3x24x24xbf16>
    %24 = vector.shape_cast %23 : vector<3x24x24xbf16> to vector<72x24xbf16>
    %c2 = arith.constant 2 : index
    %c0_14 = arith.constant 0 : index
    %c0_15 = arith.constant 0 : index
    %25 = vector.load %arg3[%c2, %c0_14, %c0_15] : memref<3x24x128xbf16, #tpu.memory_space<vmem>>, vector<1x24x128xbf16>
    %26 = vector.shape_cast %25 : vector<1x24x128xbf16> to vector<24x128xbf16>
    %cst_16 = arith.constant dense<0.000000e+00> : vector<72x128xf32>
    %27 = tpu.matmul %24, %26, %cst_16 {dimension_numbers = #tpu.dot_dimension_numbers<[1], [0], [0], [1], [0, 0, 1, 1], [], []>} : vector<72x24xbf16>, vector<24x128xbf16>, vector<72x128xf32> -> vector<72x128xf32>
    %c0_17 = arith.constant 0 : index
    %c0_18 = arith.constant 0 : index
    %28 = vector.load %arg7[%c0_17, %c0_18] : memref<72x128xf32, #tpu.memory_space<vmem>>, vector<72x128xf32>
    %29 = arith.addf %28, %27 : vector<72x128xf32>
    %c0_19 = arith.constant 0 : index
    %c0_20 = arith.constant 0 : index
    %30 = vector.load %arg7[%c0_19, %c0_20] : memref<72x128xf32, #tpu.memory_space<vmem>>, vector<72x128xf32>
    tpu.vector_store %arg7[%c0_19, %c0_20], %29 {strides = array<i32>} : memref<72x128xf32, #tpu.memory_space<vmem>>, vector<72x128xf32>,
    %c0_21 = arith.constant 0 : index
    %c0_22 = arith.constant 0 : index
    %31 = vector.load %arg7[%c0_21, %c0_22] : memref<72x128xf32, #tpu.memory_space<vmem>>, vector<72x128xf32>
    %c0_23 = arith.constant 0 : index
    %c0_24 = arith.constant 0 : index
    %32 = vector.load %arg4[%c0_23, %c0_24] : memref<1x128xf32, #tpu.memory_space<vmem>>, vector<1x128xf32>
    %33 = vector.broadcast %32 : vector<1x128xf32> to vector<72x128xf32>
    %34 = arith.mulf %31, %33 : vector<72x128xf32>
    %c0_25 = arith.constant 0 : index
    %c0_26 = arith.constant 0 : index
    %35 = vector.load %arg5[%c0_25, %c0_26] : memref<1x128xf32, #tpu.memory_space<vmem>>, vector<1x128xf32>
    %36 = vector.broadcast %35 : vector<1x128xf32> to vector<72x128xf32>
    %37 = arith.addf %34, %36 : vector<72x128xf32>
    %cst_27 = arith.constant 0.000000e+00 : f32
    %38 = vector.broadcast %cst_27 : f32 to vector<72x128xf32>
    %39 = arith.maximumf %37, %38 : vector<72x128xf32>
    %40 = vector.shape_cast %39 : vector<72x128xf32> to vector<3x24x128xf32>
    %41 = tpu.iota {dimensions = array<i32: 0>} : vector<3x24x1xi32>
    %c3_i32_28 = arith.constant 3 : i32
    %42 = arith.muli %arg1, %c3_i32_28 : i32
    %43 = vector.broadcast %42 : i32 to vector<3x24x1xi32>
    %44 = arith.addi %41, %43 : vector<3x24x1xi32>
    %45 = tpu.iota {dimensions = array<i32: 1>} : vector<3x24x1xi32>
    %c1_i32 = arith.constant 1 : i32
    %46 = vector.broadcast %c1_i32 : i32 to vector<3x24x1xi32>
    %47 = arith.cmpi sge, %44, %46 : vector<3x24x1xi32>
    %c16_i32 = arith.constant 16 : i32
    %48 = vector.broadcast %c16_i32 : i32 to vector<3x24x1xi32>
    %49 = arith.cmpi sle, %44, %48 : vector<3x24x1xi32>
    %50 = arith.andi %47, %49 : vector<3x24x1xi1>
    %c1_i32_29 = arith.constant 1 : i32
    %51 = vector.broadcast %c1_i32_29 : i32 to vector<3x24x1xi32>
    %52 = arith.cmpi sge, %45, %51 : vector<3x24x1xi32>
    %53 = arith.andi %50, %52 : vector<3x24x1xi1>
    %c16_i32_30 = arith.constant 16 : i32
    %54 = vector.broadcast %c16_i32_30 : i32 to vector<3x24x1xi32>
    %55 = arith.cmpi sle, %45, %54 : vector<3x24x1xi32>
    %56 = arith.andi %53, %55 : vector<3x24x1xi1>
    %cst_31 = arith.constant 0.000000e+00 : f32
    %57 = vector.shape_cast %56 : vector<3x24x1xi1> to vector<3x24x1xi1>
    %58 = vector.broadcast %57 : vector<3x24x1xi1> to vector<3x24x128xi1>
    %59 = vector.broadcast %cst_31 : f32 to vector<3x24x128xf32>
    %60 = arith.select %58, %40, %59 : vector<3x24x128xi1>, vector<3x24x128xf32>
    %61 = arith.truncf %60 : vector<3x24x128xf32> to vector<3x24x128xbf16>
    %c0_32 = arith.constant 0 : index
    %c0_33 = arith.constant 0 : index
    %c0_34 = arith.constant 0 : index
    %c0_35 = arith.constant 0 : index
    %62 = vector.load %arg6[%c0_32, %c0_33, %c0_34, %c0_35] : memref<1x3x24x128xbf16, #tpu.memory_space<vmem>>, vector<1x3x24x128xbf16>
    %63 = vector.shape_cast %62 : vector<1x3x24x128xbf16> to vector<3x24x128xbf16>
    %64 = vector.shape_cast %61 : vector<3x24x128xbf16> to vector<1x3x24x128xbf16>
    tpu.vector_store %arg6[%c0_32, %c0_33, %c0_34, %c0_35], %64 {strides = array<i32>} : memref<1x3x24x128xbf16, #tpu.memory_space<vmem>>, vector<1x3x24x128xbf16>,
    return
  }
  func.func @transform_0(%arg0: i32, %arg1: i32) -> (i32, i32, i32, i32) {
    %c0_i32 = arith.constant 0 : i32
    %c0_i32_0 = arith.constant 0 : i32
    %c0_i32_1 = arith.constant 0 : i32
    %c0_i32_2 = arith.constant 0 : i32
    return %arg0, %c0_i32, %c0_i32_0, %c0_i32_1 : i32, i32, i32, i32
  }
  func.func @transform_1(%arg0: i32, %arg1: i32) -> (i32, i32, i32) {
    %c0_i32 = arith.constant 0 : i32
    %c0_i32_0 = arith.constant 0 : i32
    %c0_i32_1 = arith.constant 0 : i32
    %c0_i32_2 = arith.constant 0 : i32
    return %c0_i32, %c0_i32_0, %c0_i32_1 : i32, i32, i32
  }
  func.func @transform_2(%arg0: i32, %arg1: i32) -> (i32, i32) {
    %c0_i32 = arith.constant 0 : i32
    %c0_i32_0 = arith.constant 0 : i32
    %c0_i32_1 = arith.constant 0 : i32
    return %c0_i32, %c0_i32_0 : i32, i32
  }
  func.func @transform_3(%arg0: i32, %arg1: i32) -> (i32, i32) {
    %c0_i32 = arith.constant 0 : i32
    %c0_i32_0 = arith.constant 0 : i32
    %c0_i32_1 = arith.constant 0 : i32
    return %c0_i32, %c0_i32_0 : i32, i32
  }
  func.func @transform_4(%arg0: i32, %arg1: i32) -> (i32, i32, i32, i32) {
    %c0_i32 = arith.constant 0 : i32
    %c0_i32_0 = arith.constant 0 : i32
    %c0_i32_1 = arith.constant 0 : i32
    return %arg0, %arg1, %c0_i32, %c0_i32_0 : i32, i32, i32, i32
  }
}

</mosaic_0001>

<bundles_post_ra>
// kernel: registration_network.2
= control target key start
LH: loop header
LB: loop body
LE: loop exit
PB: predicated region body
PF: predicated region fallthrough
CT: control target
= control target key end

     0   :  { %s1514_s15 = smov 0   ;;  %s1516_s16 = smov 0   ;;  %s1872_s0 = inlined_call_operand.vmem [shape: bf16[2,20,26,8], index: 0, kind: input, shape index: {}]   ;;  %s1873_s1 = inlined_call_operand.vmem [shape: bf16[3,24,128], index: 1, kind: input, shape index: {}]   ;;  %s1874_s2 = inlined_call_operand.vmem [shape: f32[1,128], index: 2, kind: input, shape index: {}]   ;;  %s1875_s3 = inlined_call_operand.vmem [shape: f32[1,128], index: 3, kind: input, shape index: {}]   ;;  %s1876_s4 = inlined_call_operand.vmem [shape: bf16[2,18,24,128], index: 4, kind: output, shape index: {}]  }
   0x1   :  { %s1518_s17 = smov 0   ;;  %s1520_s18 = smov 0  }
   0x2   :  { %s1522_s19 = smov 0  }
   0x3 LB: > { %s23_s20 = sadd.s32 1, %s1475_s17  ;;  %s26_s21 = sadd.s32 1, %s1479_s18  ;;  %s1483_s19 = sphi %s1522_s19, %s14_s19   ;;  %s1479_s18 = sphi %s1520_s18, %s1886_s18   ;;  %s1475_s17 = sphi %s1518_s17, %s1885_s17   ;;  %s1471_s16 = sphi %s1516_s16, %s1884_s16   ;;  %s1467_s15 = sphi %s1514_s15, %s1883_s15  }
   0x4   : > { %p24_p0 = scmp.ge.s32.totalorder %s23_s20, 6  ;;  %p1152_p1 = scmp.ge.s32.totalorder %s1483_s19, 1 }
   0x5   : > { %p176_p2 = scmp.lt.s32.totalorder %s1483_s19, 13 }
   0x6   : > { %s1888_s20 = smov (%p24_p0, %s23_s20), 0  ;;  %s1890_s21 = smov (!%p24_p0, %s26_s21), %s1479_s18 }
   0x7   : > { %p177_p3 = pnand %p1152_p1, %p176_p2  ;;  %p28_p4 = scmp.ge.s32.totalorder %s1890_s21, 2 }
   0x8   : > { %p207_p5 = scmp.lt.s32.totalorder (!%p177_p3), %s1471_s16, 1  ;;  %v1485_v0 = vmov (!%p177_p3), 0.0   ;;  %v1553_v1 = vld [vmem:[%s1873_s1 + $0xc] sm:$0xff] (!%p177_p3)   ;;  %s1218_s24 = smul.u32 (!%p177_p3), 48, %s1467_s15  ;;  %vm530_vm0 = vcmask (!%p177_p3), 1043456   ;;  %vm399_vm1 = vcmask (!%p177_p3), 1046528  }
   0x9   : > { %s1892_s21 = smov (%p28_p4, %s1890_s21), 0  ;;  %180 = sbr.rel (%p177_p3) target bundleno = 432 (0x1b0), region = 36 }
   0xa   : > { %1296 = vmatprep.subr.bf16.mxu0 (!%p177_p3), %v1485_v0  ;;  %1272 = vmatprep.subr.bf16.mxu1 (!%p177_p3), %v1485_v0  ;;  %v1436_v2 = vld [vmem:[%s1873_s1 + $0x14] ss:$0 sps:$4 sm:$0xff] (!%p177_p3)   ;;  %vm1486_vm2 = vmmov (!%p177_p3), 0   ;;  %vm303_vm3 = vsmask.f32 (!%p177_p3), 7424  ;;  %s1487_s6 = smov (!%p177_p3), 16  }
   0xb   : > { %1297 = vmatpush3.bf16.msra.mxu0 (!%p177_p3), %v1553_v1  ;;  %v1563_v3 = vsel (!%p177_p3), %vm530_vm0, %v1436_v2, 0  ;;  %1300 = vmatprep.mubr.msk.bf16.mxu0 (!%p177_p3), %vm1486_vm2, %v1485_v0  ;;  %v1437_v35 = vld [vmem:[%s1873_s1] sm:$0xff] (!%p177_p3)   ;;  %s1488_s9 = smov (!%p177_p3), 8   ;;  %v1439_v47 = vld [vmem:[%s1873_s1 + $0x8] ss:$0 sps:$4 sm:$0xff] (!%p177_p3)   ;;  %vm435_vm4 = vcmask (!%p177_p3), 64512  }
   0xc   : > { %1298 = vmatprep.subr.bf16.mxu0 (!%p177_p3), %v1485_v0  ;;  %1276 = vmatprep.mubr.msk.bf16.mxu1 (!%p177_p3), %vm1486_vm2, %v1485_v0  ;;  %v532_v55 = vsel (!%p177_p3), %vm530_vm0, %v1439_v47, 0  ;;  %vm461_vm5 = vcmask (!%p177_p3), 130048   ;;  %vm514_vm6 = vcmask (!%p177_p3), 195584   ;;  %s212_s23 = smul.u32 (!%p177_p3), 3, %s1467_s15 }
   0xd   : > { %1273 = vmatpush3.bf16.msra.mxu1 (!%p177_p3), %v1437_v35  ;;  %v1438_v35 = vld [vmem:[%s1873_s1 + $0x18] sm:$0xff] (!%p177_p3)  }
   0xe   : > { %1274 = vmatprep.subr.bf16.mxu1 (!%p177_p3), %v1485_v0  ;;  %p215_p6 = scmp.lt.s32.totalorder (!%p177_p3), %s212_s23, 17 }
   0xf   : > { %1299 = vmatpush3.bf16.msra.mxu0 (!%p177_p3), %v1563_v3 }
  0x10   : > { %s1894_s16 = smov (!%p207_p5, %s1471_s16), 1  ;;  %1320 = vmatprep.subr.bf16.mxu0 %v1485_v0 }
  0x11   : > { %s1377_s27 = smul.u32 320, %s1894_s16  ;;  %1275 = vmatpush3.bf16.msra.mxu1 %v532_v55 }
  0x12   : > { %1344 = vmatprep.subr.bf16.mxu1 %v1485_v0  ;;  %s1379_s15 = smul.u32 54, %s1894_s16 }
  0x13   : > { %s211_s30 = scalar_lea.vmem %s1872_s0, %s1377_s27 }
  0x14   : > { %s1568_s5 = scalar_lea.vmem %s211_s30, %s1218_s24 }
  0x15   : > { %v1575_v4 = vld [vmem:[%s1568_s5 + $0x18] sm:$0xf]  ;;  %v235_v5 = vld [vmem:[%s1568_s5 + $0x1c] sm:$0x1]  ;;  %v1580_v6 = vld [vmem:[%s1568_s5 + $0x10] sm:$0xff]   ;;  %s216_s24 = scalar_select %p215_p6, %s212_s23, 17 }
  0x16   : > { %v1168_v7 = vcombine.low %v1575_v4, %v235_v5  ;;  %v1585_v8 = vld [vmem:[%s1568_s5 + $0x28] sm:$0xf]  ;;  %v239_v9 = vld [vmem:[%s1568_s5 + $0x2c] sm:$0x1]  ;;  %v403_v10 = vrot.slane %v1580_v6, 1  ;;  %v320_v11 = vshrl.u32 %v1580_v6, 16 }
  0x17   : > { %v322_v12 = vshll.u32 %v1580_v6, 16  ;;  %v1592_v13 = vld [vmem:[%s1568_s5 + $0x20] sm:$0xff]   ;;  %v1595_v14 = vcombine.low %v1585_v8, %v239_v9  ;;  %v1602_v21 = vld [vmem:[%s1568_s5 + $0x8] sm:$0xf]  ;;  %v231_v26 = vld [vmem:[%s1568_s5 + $0xc] sm:$0x1] }
  0x18   : > { %v404_v15 = vrot.slane %v1168_v7, 1  ;;  %v327_v16 = vshll.u32 %v1168_v7, 16  ;;  %v331_v17 = vshrl.u32 %v1168_v7, 16  ;;  %v1598_v18 = vld [vmem:[%s1568_s5] sm:$0xff]   ;;  %v406_v20 = vrot.slane %v1592_v13, 1  ;;  %v1623_v44 = vld [vmem:[%s1568_s5 + $0x30] sm:$0xff]  }
  0x19   : > { %v324_v19 = vrot.slane %v322_v12, 1  ;;  %v407_v24 = vrot.slane %v1595_v14, 1  ;;  %v337_v25 = vshll.u32 %v1592_v13, 16  ;;  %v335_v28 = vshrl.u32 %v1592_v13, 16  ;;  %v1626_v45 = vld [vmem:[%s1568_s5 + $0x38] sm:$0xf] }
  0x1a   : > { %v405_v22 = vsel %vm399_vm1, %v403_v10, %v404_v15  ;;  %v329_v23 = vrot.slane %v327_v16, 1  ;;  %v342_v29 = vshll.u32 %v1595_v14, 16  ;;  %v1167_v30 = vcombine.low %v1602_v21, %v231_v26  ;;  %v243_v46 = vld [vmem:[%s1568_s5 + $0x3c] sm:$0x1]  ;;  %v1647_v62 = vld [vmem:[%s1568_s5 + $0x40] sm:$0xff]   ;;  %s1378_s27 = smul.u32 3, %s216_s24 }
  0x1b   : > { %419 = vrot.lane.b32.xlu0 %v405_v22, %s1487_s6  ;;  %v325_v27 = vor.u32 %v324_v19, %v320_v11  ;;  %v339_v32 = vrot.slane %v337_v25, 1  ;;  %v305_v33 = vshrl.u32 %v1598_v18, 16  ;;  %v307_v34 = vshll.u32 %v1598_v18, 16  ;;  %v1650_v63 = vld [vmem:[%s1568_s5 + $0x48] sm:$0xf] }
  0x1c   : > { %v333_v31 = vor.u32 %v331_v17, %v329_v23  ;;  %v312_v37 = vshll.u32 %v1167_v30, 16  ;;  %v408_v39 = vsel %vm399_vm1, %v406_v20, %v407_v24  ;;  %v344_v41 = vrot.slane %v342_v29, 1  ;;  %v247_v2 = vld [vmem:[%s1568_s5 + $0x4c] sm:$0x1]  ;;  %s219_s16 = sadd.s32 %s1379_s15, %s1378_s27 }
  0x1d   : > { %v330_v36 = vsel %vm303_vm3, %v325_v27, %v329_v23  ;;  %v309_v38 = vrot.slane %v307_v34, 1  ;;  %v340_v40 = vor.u32 %v339_v32, %v335_v28  ;;  %v400_v49 = vrot.slane %v1598_v18, 1  ;;  %s1154_s30 = sshll.u32 %s219_s16, 2 }
  0x1e   : > { %385 = vrot.lane.b32.xlu1 %v333_v31, %s1488_s9  ;;  %v314_v43 = vrot.slane %v312_v37, 1  ;;  %v401_v50 = vrot.slane %v1167_v30, 1  ;;  %v346_v51 = vshrl.u32 %v1595_v14, 16  ;;  %v1170_v53 = vcombine.low %v1626_v45, %v243_v46  ;;  %v1442_v37 = vld [vmem:[%s1873_s1 + $0x20] ss:$0 sps:$4 sm:$0xff]   ;;  %s1800_s7 = scalar_lea.vmem %s1876_s4, %s1154_s30 }
  0x1f   : > { %383 = vrot.lane.b32.xlu0 %v330_v36, %s1488_s9  ;;  %v310_v42 = vor.u32 %v309_v38, %v305_v33  ;;  %v345_v48 = vsel %vm303_vm3, %v340_v40, %v344_v41  ;;  %v352_v54 = vshll.u32 %v1623_v44, 16  ;;  %v316_v58 = vshrl.u32 %v1167_v30, 16 }
  0x20   : > { %v402_v56 = vsel %vm399_vm1, %v400_v49, %v401_v50  ;;  %v348_v57 = vor.u32 %v346_v51, %v344_v41  ;;  %v350_v59 = vshrl.u32 %v1623_v44, 16  ;;  %v357_v61 = vshll.u32 %v1170_v53, 16 }
  0x21   : > { %v315_v52 = vsel %vm303_vm3, %v310_v42, %v314_v43  ;;  %v354_v60 = vrot.slane %v352_v54, 1  ;;  %v318_v5 = vor.u32 %v316_v58, %v314_v43  ;;  %v1171_v10 = vcombine.low %v1650_v63, %v247_v2 }
  0x22   : > { %423 = vrot.lane.b32.xlu1 %v408_v39, %s1487_s6  ;;  %v359_v9 = vrot.slane %v357_v61, 1  ;;  %v367_v11 = vshll.u32 %v1647_v62, 16  ;;  %v409_v12 = vrot.slane %v1623_v44, 1  ;;  %v410_v14 = vrot.slane %v1170_v53, 1 }
  0x23   : > { %421 = vrot.lane.b32.xlu0 %v404_v15, %s1487_s6  ;;  %v355_v7 = vor.u32 %v354_v60, %v350_v59  ;;  %v361_v15 = vshrl.u32 %v1170_v53, 16  ;;  %v365_v17 = vshrl.u32 %v1647_v62, 16  ;;  %v372_v20 = vshll.u32 %v1171_v10, 16 }
  0x24   : > { %v369_v19 = vrot.slane %v367_v11, 1  ;;  %v411_v22 = vsel %vm399_vm1, %v409_v12, %v410_v14  ;;  %v412_v26 = vrot.slane %v1647_v62, 1  ;;  %v413_v27 = vrot.slane %v1171_v10, 1 }
  0x25   : > { %v360_v16 = vsel %vm303_vm3, %v355_v7, %v359_v9  ;;  %v363_v23 = vor.u32 %v361_v15, %v359_v9  ;;  %v374_v25 = vrot.slane %v372_v20, 1  ;;  %v376_v28 = vshrl.u32 %v1171_v10, 16 }
  0x26   : > { %387 = vrot.lane.b32.xlu1 %v345_v48, %s1488_s9  ;;  %v414_v30 = vsel %vm399_vm1, %v412_v26, %v413_v27  ;;  %v1160_v40 = vcombine.low %v1575_v4, %v1575_v4  ;;  %v1158_v55 = vcombine.low %v1602_v21, %v1602_v21  ;;  %v1164_v11 = vcombine.low %v1626_v45, %v1626_v45 }
  0x27   : > { %379 = vrot.lane.b32.xlu0 %v315_v52, %s1488_s9  ;;  %v378_v31 = vor.u32 %v376_v28, %v374_v25  ;;  %v1166_v26 = vcombine.low %v1650_v63, %v1650_v63 }
  0x2a   : > { %415 = vrot.lane.b32.xlu1 %v402_v56, %s1487_s6 }
  0x2b   : > { %389 = vrot.lane.b32.xlu0 %v348_v57, %s1488_s9 }
  0x2e   : > { %425 = vrot.lane.b32.xlu1 %v407_v24, %s1487_s6  ;;  %v370_v24 = vor.u32 %v369_v19, %v365_v17 }
  0x2f   : > { %381 = vrot.lane.b32.xlu0 %v318_v5, %s1488_s9 }
  0x30   : > { %v375_v29 = vsel %vm303_vm3, %v370_v24, %v374_v25 }
  0x32   : > { %417 = vrot.lane.b32.xlu1 %v401_v50, %s1487_s6  ;;  %v1162_v50 = vcombine.low %v1585_v8, %v1585_v8 }
  0x33   : > { %391 = vrot.lane.b32.xlu0 %v360_v16, %s1488_s9 }
  0x36   : > { %427 = vrot.lane.b32.xlu1 %v411_v22, %s1487_s6 }
  0x37   : > { %393 = vrot.lane.b32.xlu0 %v363_v23, %s1488_s9 }
  0x3a   : > { %429 = vrot.lane.b32.xlu1 %v410_v14, %s1487_s6 }
  0x3b   : > { %395 = vrot.lane.b32.xlu0 %v375_v29, %s1488_s9 }
  0x3e   : > { %431 = vrot.lane.b32.xlu1 %v414_v30, %s1487_s6 }
  0x3f   : > { %397 = vrot.lane.b32.xlu0 %v378_v31, %s1488_s9 }
  0x42   : > { %433 = vrot.lane.b32.xlu1 %v413_v27, %s1487_s6 }
  0x8d   : > { %v420_v32 = vpop.permute.xlu0 %419 }
  0x90   : > { %v386_v33 = vpop.permute.xlu1 %385 }
  0x91   : > { %v384_v34 = vpop.permute.xlu0 %383  ;;  %v445_v43 = vsel %vm435_vm4, %v1160_v40, %v386_v33  ;;  %v944_v40 = vlaneseq }
  0x92   : > { %v442_v36 = vsel %vm435_vm4, %v1580_v6, %v384_v34  ;;  %v790_v6 = vsel %vm530_vm0, %v1442_v37, 0 }
  0x93   : > { %v467_v38 = vsel %vm461_vm5, %v442_v36, %v420_v32 }
  0x94   : > { %v424_v39 = vpop.permute.xlu1 %423  ;;  %1301 = vmatmul.mubr.msk.bf16.vlgmr.msra.gmra.mrb[0].mxu0 %vm514_vm6, %v467_v38  ;;  %v492_v7 = vunpack.c.h.b16 %v467_v38 }
  0x95   : > { %v422_v41 = vpop.permute.xlu0 %421  ;;  %1321 = vmatpush3.bf16.msra.mxu0 %v1438_v35  ;;  %1304 = vmatprep.mubr.msk.bf16.mxu0 %vm1486_vm2, %v1485_v0 }
  0x96   : > { %1322 = vmatprep.subr.bf16.mxu0 %v1485_v0  ;;  %v469_v48 = vsel %vm461_vm5, %v445_v43, %v422_v41  ;;  %v1770_v43 = vshrl.u32 %v944_v40, 7 }
  0x97   : > { %v493_v2 = vunpack.c.l.b16 %v469_v48 }
  0x98   : > { %v388_v42 = vpop.permute.xlu1 %387  ;;  %vm957_vm10 = vcmp.ge.s32.totalorder %v1770_v43, 1 }
  0x99   : > { %v447_v46 = vsel %vm435_vm4, %v1592_v13, %v388_v42  ;;  %v380_v47 = vpop.permute.xlu0 %379  ;;  %1323 = vmatpush3.bf16.msra.mxu0 %v790_v6  ;;  %v502_v9 = vpack.c.b16 %v493_v2, %v492_v7  ;;  %v1768_v6 = vld [vmem:[%s1874_s2] ss:$0 sm:$0xff] }
  0x9a   : > { %v471_v4 = vsel %vm461_vm5, %v447_v46, %v424_v39  ;;  %v437_v49 = vsel %vm435_vm4, %v1598_v18, %v380_v47  ;;  %v1776_v47 = vld [vmem:[%s1875_s3] ss:$0 sm:$0xff] }
  0x9b   : > { %v1184_v51 = vcombine.low %v469_v48, %v471_v4  ;;  %v495_v57 = vunpack.c.h.b16 %v471_v4 }
  0x9c   : > { %v416_v52 = vpop.permute.xlu1 %415 }
  0x9d   : > { %v463_v53 = vsel %vm461_vm5, %v437_v49, %v416_v52  ;;  %1305 = vmatmul.mubr.msk.bf16.gmra.mrb[4].mxu0 %vm514_vm6, %v1184_v51  ;;  %v390_v54 = vpop.permute.xlu0 %389 }
  0x9e   : > { %1277 = vmatmul.mubr.msk.bf16.vlgmr.msra.gmra.mrb[0].mxu1 %vm514_vm6, %v463_v53  ;;  %v450_v13 = vsel %vm435_vm4, %v1162_v50, %v390_v54  ;;  %1308 = vmatprep.mubr.msk.bf16.mxu0 %vm1486_vm2, %v1485_v0 }
  0x9f   : > { %1346 = vmatpush3.bf16.msra.mxu1 %v1553_v1  ;;  %1280 = vmatprep.mubr.msk.bf16.mxu1 %vm1486_vm2, %v1485_v0 }
  0xa0   : > { %v426_v8 = vpop.permute.xlu1 %425  ;;  %1345 = vmatprep.subr.bf16.mxu1 %v1485_v0 }
  0xa1   : > { %v473_v18 = vsel %vm461_vm5, %v450_v13, %v426_v8  ;;  %v382_v56 = vpop.permute.xlu0 %381 }
  0xa2   : > { %v496_v58 = vunpack.c.l.b16 %v473_v18  ;;  %v440_v59 = vsel %vm435_vm4, %v1158_v55, %v382_v56  ;;  %v1173_v23 = vcombine.low %v473_v18, %v473_v18 }
  0xa3   : > { %1347 = vmatpush3.bf16.msra.mxu1 %v1563_v3 }
  0xa4   : > { %v626_v21 = vpack.c.b16 %v496_v58, %v495_v57  ;;  %v418_v60 = vpop.permute.xlu1 %417 }
  0xa5   : > { %v465_v61 = vsel %vm461_vm5, %v440_v59, %v418_v60  ;;  %v392_v5 = vpop.permute.xlu0 %391  ;;  %v1795_v59 = vadd.s32 16, %v1770_v43 }
  0xa6   : > { %v1172_v1 = vcombine.low %v465_v61, %v467_v38  ;;  %1309 = vmatmul.mubr.msk.bf16.gmra.mrb[8].mxu0 %vm514_vm6, %v626_v21  ;;  %v452_v3 = vsel %vm435_vm4, %v1623_v44, %v392_v5 }
  0xa7   : > { %1324 = vmatprep.mubr.msk.bf16.mxu0 %vm1486_vm2, %v1485_v0  ;;  %vm971_vm14 = vcmp.le.s32.totalorder %v1795_v59, 16 }
  0xa8   : > { %1281 = vmatmul.mubr.msk.bf16.gmra.mrb[4].mxu1 %vm514_vm6, %v1172_v1  ;;  %v428_v10 = vpop.permute.xlu1 %427 }
  0xa9   : > { %1284 = vmatprep.mubr.msk.bf16.mxu1 %vm1486_vm2, %v1485_v0  ;;  %v394_v12 = vpop.permute.xlu0 %393  ;;  %v475_v14 = vsel %vm461_vm5, %v452_v3, %v428_v10 }
  0xaa   : > { %v455_v15 = vsel %vm435_vm4, %v1164_v11, %v394_v12  ;;  %v1196_v16 = vcombine.low %v473_v18, %v475_v14  ;;  %v618_v45 = vunpack.c.h.b16 %v475_v14 }
  0xac   : > { %v430_v44 = vpop.permute.xlu1 %429 }
  0xad   : > { %v477_v17 = vsel %vm461_vm5, %v455_v15, %v430_v44  ;;  %v396_v22 = vpop.permute.xlu0 %395 }
  0xae   : > { %1325 = vmatmul.mubr.msk.bf16.vlgmr.msra.gmra.mrb[0].mxu0 %vm514_vm6, %v471_v4  ;;  %v619_v19 = vunpack.c.l.b16 %v477_v17  ;;  %v457_v24 = vsel %vm435_vm4, %v1647_v62, %v396_v22  ;;  %v1185_v63 = vcombine.low %v477_v17, %v477_v17 }
  0xaf   : > { %1328 = vmatprep.mubr.msk.bf16.mxu0 %vm1486_vm2, %v1485_v0 }
  0xb0   : > { %1285 = vmatmul.mubr.msk.bf16.gmra.mrb[8].mxu1 %vm514_vm6, %v502_v9  ;;  %v765_v20 = vpack.c.b16 %v619_v19, %v618_v45  ;;  %v432_v25 = vpop.permute.xlu1 %431 }
  0xb1   : > { %1288 = vmatprep.mubr.msk.bf16.mxu1 %vm1486_vm2, %v1485_v0  ;;  %v398_v27 = vpop.permute.xlu0 %397  ;;  %v479_v28 = vsel %vm461_vm5, %v457_v24, %v432_v25 }
  0xb2   : > { %v460_v29 = vsel %vm435_vm4, %v1166_v26, %v398_v27 }
  0xb4   : > { %v434_v30 = vpop.permute.xlu1 %433 }
  0xb5   : > { %v481_v31 = vsel %vm461_vm5, %v460_v29, %v434_v30 }
  0xb6   : > { %1329 = vmatmul.mubr.msk.bf16.gmra.mrb[4].mxu0 %vm514_vm6, %v1196_v16  ;;  %v1197_v62 = vcombine.low %v481_v31, %v481_v31 }
  0xb7   : > { %1332 = vmatprep.mubr.msk.bf16.mxu0 %vm1486_vm2, %v1485_v0 }
  0xb8   : > { %1289 = vmatmul.mubr.msk.bf16.gmra.mrb[12].mxu1 %vm514_vm6, %v471_v4 }
  0xb9   : > { %1292 = vmatprep.mubr.msk.bf16.mxu1 %vm1486_vm2, %v1485_v0 }
  0xbe   : > { %1333 = vmatmul.mubr.msk.bf16.gmra.mrb[8].mxu0 %vm514_vm6, %v765_v20 }
  0xbf   : > { %1336 = vmatprep.mubr.msk.bf16.mxu0 %vm1486_vm2, %v1485_v0 }
  0xc0   : > { %1293 = vmatmul.mubr.msk.bf16.gmra.mrb[16].mxu1 %vm514_vm6, %v1173_v23 }
  0xc1   : > { %1312 = vmatprep.mubr.msk.bf16.mxu1 %vm1486_vm2, %v1485_v0 }
  0xc6   : > { %1337 = vmatmul.mubr.msk.bf16.gmra.mrb[12].mxu0 %vm514_vm6, %v479_v28 }
  0xc7   : > { %1340 = vmatprep.mubr.msk.bf16.mxu0 %vm1486_vm2, %v1485_v0 }
  0xc8   : > { %1313 = vmatmul.mubr.msk.bf16.vlgmr.msra.gmra.mrb[12].mxu1 %vm514_vm6, %v475_v14 }
  0xc9   : > { %1316 = vmatprep.mubr.msk.bf16.mxu1 %vm1486_vm2, %v1485_v0  ;;  %v1763_v0 = vstv %s212_s23 }
  0xca   : > { %vm948_vm7 = vcmp.ge.s32.totalorder %v1763_v0, 1  ;;  %vm951_vm8 = vcmp.le.s32.totalorder %v1763_v0, 16  ;;  %v942_v18 = vadd.s32 1, %v1763_v0 }
  0xcb   : > { %vm1782_vm9 = vmand %vm948_vm7, %vm951_vm8 }
  0xcc   : > { %vm960_vm11 = vmand %vm1782_vm9, %vm957_vm10  ;;  %vm949_vm12 = vcmp.ge.s32.totalorder %v942_v18, 1  ;;  %vm952_vm13 = vcmp.le.s32.totalorder %v942_v18, 16 }
  0xcd   : > { %vm1808_vm15 = vmand %vm949_vm12, %vm952_vm13 }
  0xce   : > { %1341 = vmatmul.mubr.msk.bf16.gmra.mrb[16].mxu0 %vm514_vm6, %v1197_v62  ;;  %vm974_vm0 = vmand %vm1782_vm9, %vm971_vm14 }
  0xcf   : > { %vm963_vm1 = vmand %vm1808_vm15, %vm957_vm10 }
  0xd0   : > { %1317 = vmatmul.mubr.msk.bf16.gmra.mrb[16].mxu1 %vm514_vm6, %v1185_v63  ;;  %vm977_vm2 = vmand %vm1808_vm15, %vm971_vm14  ;;  %v943_v63 = vadd.s32 2, %v1763_v0 }
  0xd2   : > { %vm950_vm3 = vcmp.ge.s32.totalorder %v943_v63, 1  ;;  %vm953_vm4 = vcmp.le.s32.totalorder %v943_v63, 16 }
  0xd3   : > { %vm1837_vm5 = vmand %vm950_vm3, %vm953_vm4 }
  0xd4   : > { %vm966_vm6 = vmand %vm1837_vm5, %vm957_vm10 }
  0xd5   : > { %vm980_vm7 = vmand %vm1837_vm5, %vm971_vm14 }
 0x171   : > { %v568_v32 = vpop.f32.mrb[0].mxu1 }
 0x172   : > { %v1278_v33 = vpop.f32.mrb[1].mxu1 }
 0x173   : > { %v571_v34 = vpop.f32.mrb[2].mxu1 }
 0x174   : > { %v1279_v35 = vpop.f32.mrb[3].mxu1 }
 0x17b   : > { %v576_v36 = vpop.f32.mrb[4].mxu1 }
 0x17c   : > { %v1282_v37 = vpop.f32.mrb[5].mxu1 }
 0x17d   : > { %v579_v38 = vpop.f32.mrb[6].mxu1 }
 0x17e   : > { %v1283_v39 = vpop.f32.mrb[7].mxu1 }
 0x181   : > { %v826_v41 = vpop.f32.mrb[0].mxu0 }
 0x182   : > { %v1348_v42 = vadd.f32 %v826_v41, %v568_v32  ;;  %v1326_v46 = vpop.f32.mrb[1].mxu0 }
 0x183   : > { %v584_v48 = vpop.f32.mrb[8].mxu1  ;;  %v829_v4 = vpop.f32.mrb[2].mxu0 }
 0x184   : > { %v907_v49 = vmul.f32 %v1348_v42, %v1768_v6  ;;  %v1349_v50 = vadd.f32 %v829_v4, %v571_v34  ;;  %v1286_v51 = vpop.f32.mrb[9].mxu1  ;;  %v1327_v52 = vpop.f32.mrb[3].mxu0 }
 0x185   : > { %v587_v53 = vpop.f32.mrb[10].mxu1 }
 0x186   : > { %v923_v54 = vadd.f32 %v1776_v47, %v907_v49  ;;  %v908_v55 = vmul.f32 %v1349_v50, %v1768_v6  ;;  %v1287_v8 = vpop.f32.mrb[11].mxu1 }
 0x188   : > { %v932_v56 = vmax.f32 %v923_v54, 0.0  ;;  %v924_v57 = vadd.f32 %v1776_v47, %v908_v55 }
 0x189   : > { %v834_v58 = vpop.f32.mrb[4].mxu0 }
 0x18a   : > { %v933_v21 = vmax.f32 %v924_v57, 0.0  ;;  %v1350_v60 = vadd.f32 %v834_v58, %v576_v36  ;;  %v1330_v61 = vpop.f32.mrb[5].mxu0  ;;  %v999_v2 = vsel %vm960_vm11, %v932_v56, 0.0 }
 0x18b   : > { %v837_v1 = vpop.f32.mrb[6].mxu0 }
 0x18c   : > { %v1000_v5 = vsel %vm1782_vm9, %v933_v21, 0.0  ;;  %v909_v7 = vmul.f32 %v1350_v60, %v1768_v6  ;;  %v1351_v9 = vadd.f32 %v837_v1, %v579_v38  ;;  %v1331_v3 = vpop.f32.mrb[7].mxu0 }
 0x18d   : > { %v1231_v10 = vpack.c.bf16 %v1000_v5, %v999_v2 }
 0x18e   : > { %v925_v11 = vadd.f32 %v1776_v47, %v909_v7  ;;  %v910_v12 = vmul.f32 %v1351_v9, %v1768_v6 }
 0x18f   : > { %1232 = vst [vmem:[%s1800_s7] sm:$0xff] %v1231_v10  }
 0x190   : > { %v934_v15 = vmax.f32 %v925_v11, 0.0  ;;  %v926_v44 = vadd.f32 %v1776_v47, %v910_v12 }
 0x191   : > { %v842_v16 = vpop.f32.mrb[8].mxu0 }
 0x192   : > { %v935_v17 = vmax.f32 %v926_v44, 0.0  ;;  %v1352_v45 = vadd.f32 %v842_v16, %v584_v48  ;;  %v1334_v19 = vpop.f32.mrb[9].mxu0  ;;  %v1001_v22 = vsel %vm974_vm0, %v934_v15, 0.0 }
 0x193   : > { %v845_v20 = vpop.f32.mrb[10].mxu0 }
 0x194   : > { %v1002_v23 = vsel %vm963_vm1, %v935_v17, 0.0  ;;  %v911_v24 = vmul.f32 %v1352_v45, %v1768_v6  ;;  %v1353_v25 = vadd.f32 %v845_v20, %v587_v53  ;;  %v1335_v26 = vpop.f32.mrb[11].mxu0 }
 0x195   : > { %v1236_v27 = vpack.c.bf16 %v1002_v23, %v1001_v22 }
 0x196   : > { %v927_v28 = vadd.f32 %v1776_v47, %v911_v24  ;;  %v912_v29 = vmul.f32 %v1353_v25, %v1768_v6 }
 0x197   : > { %1248 = vst [vmem:[%s1800_s7 + $0x8] sm:$0xff] %v1236_v27  }
 0x198   : > { %v936_v30 = vmax.f32 %v927_v28, 0.0  ;;  %v928_v31 = vadd.f32 %v1776_v47, %v912_v29 }
 0x199   : > { %v850_v62 = vpop.f32.mrb[12].mxu0 }
 0x19a   : > { %v937_v32 = vmax.f32 %v928_v31, 0.0  ;;  %v1338_v33 = vpop.f32.mrb[13].mxu0  ;;  %v1003_v36 = vsel %vm1808_vm15, %v936_v30, 0.0 }
 0x19b   : > { %v714_v34 = vpop.f32.mrb[12].mxu1  ;;  %v853_v35 = vpop.f32.mrb[14].mxu0 }
 0x19c   : > { %v1004_v37 = vsel %vm977_vm2, %v937_v32, 0.0  ;;  %v1354_v38 = vadd.f32 %v850_v62, %v714_v34  ;;  %v1314_v39 = vpop.f32.mrb[13].mxu1  ;;  %v1339_v40 = vpop.f32.mrb[15].mxu0 }
 0x19d   : > { %v1241_v41 = vpack.c.bf16 %v1004_v37, %v1003_v36  ;;  %v717_v42 = vpop.f32.mrb[14].mxu1 }
 0x19e   : > { %v913_v46 = vmul.f32 %v1354_v38, %v1768_v6  ;;  %v1355_v48 = vadd.f32 %v853_v35, %v717_v42  ;;  %v1315_v0 = vpop.f32.mrb[15].mxu1 }
 0x19f   : > { %1249 = vst [vmem:[%s1800_s7 + $0x10] sm:$0xff] %v1241_v41  }
 0x1a0   : > { %v929_v4 = vadd.f32 %v1776_v47, %v913_v46  ;;  %v914_v50 = vmul.f32 %v1355_v48, %v1768_v6 }
 0x1a1   : > { %v858_v51 = vpop.f32.mrb[16].mxu0 }
 0x1a2   : > { %v938_v52 = vmax.f32 %v929_v4, 0.0  ;;  %v930_v53 = vadd.f32 %v1776_v47, %v914_v50  ;;  %v1342_v54 = vpop.f32.mrb[17].mxu0 }
 0x1a3   : > { %v722_v13 = vpop.f32.mrb[16].mxu1  ;;  %v861_v55 = vpop.f32.mrb[18].mxu0 }
 0x1a4   : > { %v939_v8 = vmax.f32 %v930_v53, 0.0  ;;  %v1356_v18 = vadd.f32 %v858_v51, %v722_v13  ;;  %v1318_v56 = vpop.f32.mrb[17].mxu1  ;;  %v1343_v57 = vpop.f32.mrb[19].mxu0  ;;  %v1005_v21 = vsel %vm966_vm6, %v938_v52, 0.0 }
 0x1a5   : > { %v725_v58 = vpop.f32.mrb[18].mxu1 }
 0x1a6   : > { %v1006_v60 = vsel %vm1837_vm5, %v939_v8, 0.0  ;;  %v915_v61 = vmul.f32 %v1356_v18, %v1768_v6  ;;  %v1319_v1 = vpop.f32.mrb[19].mxu1 }
 0x1a7   : > { %v1246_v2 = vpack.c.bf16 %v1006_v60, %v1005_v21 }
 0x1a8   : > { %v931_v43 = vadd.f32 %v1776_v47, %v915_v61 }
 0x1a9   : > { %1250 = vst [vmem:[%s1800_s7 + $0x18] sm:$0xff] %v1246_v2  }
 0x1aa   : > { %v940_v5 = vmax.f32 %v931_v43, 0.0 }
 0x1ac   : > { %v1007_v7 = vsel %vm980_vm7, %v940_v5, 0.0 }
 0x1ad   : > { %v1227_v9 = vpack.c.bf16 %v1007_v7, %v1007_v7 }
 0x1af   : > { %1055 = vst [vmem:[%s1800_s7 + $0x20] sm:$0xf] %v1227_v9 }
 0x1b0 PF: > { %s14_s19 = sadd.s32 1, %s1483_s19   ;;  %s1883_s15 = smov %s1475_s17 }
 0x1b1   : > { %p11_p7 = scmp.ge.s32.totalorder %s14_s19, 14   ;;  %s1884_s16 = smov %s1479_s18 }
 0x1b2   : > { %s1885_s17 = smov %s1888_s20  ;;  %s1886_s18 = smov %s1892_s21 }
 0x1b3   :  { %13 = sbr.rel (!%p11_p7) target bundleno = 3 (0x3), region = 69 }

// kernel: registration_network.3
= control target key start
LH: loop header
LB: loop body
LE: loop exit
PB: predicated region body
PF: predicated region fallthrough
CT: control target
= control target key end

     0   :  { %s2778_s15 = smov 0   ;;  %s2780_s16 = smov 0   ;;  %s3374_s0 = inlined_call_operand.vmem [shape: bf16[2,18,24,128], index: 0, kind: input, shape index: {}]   ;;  %s3375_s1 = inlined_call_operand.vmem [shape: bf16[3,384,128], index: 1, kind: input, shape index: {}]   ;;  %s3376_s2 = inlined_call_operand.vmem [shape: f32[1,128], index: 2, kind: input, shape index: {}]   ;;  %s3377_s3 = inlined_call_operand.vmem [shape: f32[1,128], index: 3, kind: input, shape index: {}]   ;;  %s3378_s4 = inlined_call_operand.vmem [shape: f32[2,1,128], index: 4, kind: output, shape index: {}]  }
   0x1   :  { %s2782_s17 = smov 0   ;;  %s2784_s18 = smov 0  }
   0x2   :  { %s2786_s19 = smov 0  }
   0x3 LB: > { %s23_s20 = sadd.s32 1, %s2742_s17  ;;  %s26_s21 = sadd.s32 1, %s2746_s18  ;;  %s2750_s19 = sphi %s2786_s19, %s14_s19   ;;  %s2746_s18 = sphi %s2784_s18, %s3382_s18   ;;  %s2742_s17 = sphi %s2782_s17, %s3381_s17   ;;  %s2738_s16 = sphi %s2780_s16, %s3380_s16   ;;  %s2734_s15 = sphi %s2778_s15, %s3379_s15  }
   0x4   : > { %p24_p0 = scmp.ge.s32.totalorder %s23_s20, 2  ;;  %p1947_p1 = scmp.ge.s32.totalorder %s2750_s19, 1 }
   0x5   : > { %p174_p2 = scmp.lt.s32.totalorder %s2750_s19, 5 }
   0x6   : > { %s3384_s20 = smov (%p24_p0, %s23_s20), 0  ;;  %s3386_s21 = smov (!%p24_p0, %s26_s21), %s2746_s18 }
   0x7   : > { %p175_p3 = pnand %p1947_p1, %p174_p2  ;;  %p28_p4 = scmp.ge.s32.totalorder %s3386_s21, 2 }
   0x8   : > { %v2620_v0 = vld [vmem:[%s3375_s1 + $0x40] sm:$0xff] (!%p175_p3)   ;;  %p198_p5 = scmp.lt.s32.totalorder (!%p175_p3), %s2738_s16, 1  ;;  %v2623_v3 = vld [vmem:[%s3375_s1 + $0x48] sm:$0xff] (!%p175_p3)   ;;  %v2626_v6 = vld [vmem:[%s3375_s1 + $0x50] sm:$0xff] (!%p175_p3)   ;;  %s2145_s23 = smul.u32 (!%p175_p3), 96, %s2734_s15  ;;  %vm462_vm0 = vcmask (!%p175_p3), 1046528  }
   0x9   : > { %s3388_s21 = smov (%p28_p4, %s3386_s21), 0  ;;  %178 = sbr.rel (%p175_p3) target bundleno = 448 (0x1c0), region = 36 }
   0xa   : > { %v2621_v1 = vld [vmem:[%s3375_s1 + $0x80] sm:$0xff] (!%p175_p3)   ;;  %2146 = vmatprep.subr.bf16.mxu0 (!%p175_p3), %v2620_v0  ;;  %v2624_v4 = vld [vmem:[%s3375_s1 + $0x88] sm:$0xff] (!%p175_p3)   ;;  %v2627_v7 = vld [vmem:[%s3375_s1 + $0x90] sm:$0xff] (!%p175_p3)   ;;  %vm331_vm1 = vsmask.f32 (!%p175_p3), 7424  ;;  %p2142_p6 = scmp.ne.s32.totalorder (!%p175_p3), %s2734_s15, 0 }
   0xb   : > { %v2622_v2 = vld [vmem:[%s3375_s1] sm:$0xff] (!%p175_p3)   ;;  %2386 = vmatprep.subr.bf16.mxu1 (!%p175_p3), %v2621_v1  ;;  %v2625_v5 = vld [vmem:[%s3375_s1 + $0x8] sm:$0xff] (!%p175_p3)   ;;  %v2628_v8 = vld [vmem:[%s3375_s1 + $0x10] sm:$0xff] (!%p175_p3)  }
   0xc   : > { %2147 = vmatpush3.bf16.msra.mxu0 (!%p175_p3), %v2622_v2  ;;  %2387 = vmatpush3.bf16.msra.mxu1 (!%p175_p3), %v2621_v1  ;;  %v2629_v9 = vld [vmem:[%s3375_s1 + $0x58] sm:$0xff] (!%p175_p3)   ;;  %v2632_v12 = vld [vmem:[%s3375_s1 + $0x60] sm:$0xff] (!%p175_p3)   ;;  %v2635_v15 = vld [vmem:[%s3375_s1 + $0x68] sm:$0xff] (!%p175_p3)  }
   0xd   : > { %2148 = vmatprep.subr.bf16.mxu0 (!%p175_p3), %v2623_v3  ;;  %2388 = vmatprep.subr.bf16.mxu1 (!%p175_p3), %v2624_v4  ;;  %v2630_v10 = vld [vmem:[%s3375_s1 + $0x98] sm:$0xff] (!%p175_p3)   ;;  %v2633_v13 = vld [vmem:[%s3375_s1 + $0xa0] sm:$0xff] (!%p175_p3)   ;;  %v2636_v16 = vld [vmem:[%s3375_s1 + $0xa8] sm:$0xff] (!%p175_p3)  }
   0xe   : > { %v2631_v11 = vld [vmem:[%s3375_s1 + $0x18] sm:$0xff] (!%p175_p3)   ;;  %v2634_v14 = vld [vmem:[%s3375_s1 + $0x20] sm:$0xff] (!%p175_p3)   ;;  %v2637_v17 = vld [vmem:[%s3375_s1 + $0x28] sm:$0xff] (!%p175_p3)  }
   0xf   : > { %v2638_v18 = vld [vmem:[%s3375_s1 + $0x70] sm:$0xff] (!%p175_p3)   ;;  %v2641_v21 = vld [vmem:[%s3375_s1 + $0x78] sm:$0xff] (!%p175_p3)   ;;  %v2648_v37 = vld [vmem:[%s3375_s1 + $0x100] sm:$0xff] (!%p175_p3)  }
  0x10   : > { %s3390_s16 = smov (!%p198_p5, %s2738_s16), 1  ;;  %2149 = vmatpush3.bf16.msra.mxu0 %v2625_v5  ;;  %2389 = vmatpush3.bf16.msra.mxu1 %v2624_v4  ;;  %v2639_v19 = vld [vmem:[%s3375_s1 + $0xb0] sm:$0xff]   ;;  %v2642_v22 = vld [vmem:[%s3375_s1 + $0xb8] sm:$0xff]   ;;  %v2649_v39 = vld [vmem:[%s3375_s1 + $0x1c0] sm:$0xff]  }
  0x11   : > { %s2831_s8 = scalar_lea.vmem %s3378_s4, %s3390_s16  ;;  %2150 = vmatprep.subr.bf16.mxu0 %v2626_v6  ;;  %2390 = vmatprep.subr.bf16.mxu1 %v2627_v7  ;;  %s2578_s11 = smul.u32 216, %s3390_s16  ;;  %v2640_v20 = vld [vmem:[%s3375_s1 + $0x30] sm:$0xff]   ;;  %v2643_v26 = vld [vmem:[%s3375_s1 + $0x38] sm:$0xff]   ;;  %v2650_v42 = vld [vmem:[%s3375_s1 + $0xc0] sm:$0xff]  }
  0x12   : > { %v2651_v45 = vld [vmem:[%s3375_s1 + $0x180] sm:$0xff]   ;;  %v2652_v48 = vld [vmem:[%s3375_s1 + $0x108] sm:$0xff]   ;;  %v2658_v60 = vld [vmem:[%s3375_s1 + $0x110] sm:$0xff]  }
  0x13   : > { %s202_s16 = scalar_lea.vmem %s3374_s0, %s2578_s11  ;;  %v2653_v50 = vld [vmem:[%s3375_s1 + $0xc8] sm:$0xff]   ;;  %v2660_v3 = vld [vmem:[%s3375_s1 + $0xd0] sm:$0xff]  }
  0x14   : > { %2151 = vmatpush3.bf16.msra.mxu0 %v2628_v8  ;;  %2391 = vmatpush3.bf16.msra.mxu1 %v2627_v7  ;;  %s2886_s9 = scalar_lea.vmem %s202_s16, %s2145_s23  ;;  %v2659_v0 = vld [vmem:[%s3375_s1 + $0x1c8] sm:$0xff]   ;;  %v2662_v7 = vld [vmem:[%s3375_s1 + $0x118] sm:$0xff]  }
  0x15   : > { %2152 = vmatprep.subr.bf16.mxu0 %v2629_v9  ;;  %2392 = vmatprep.subr.bf16.mxu1 %v2630_v10  ;;  %v2644_v23 = vld [vmem:[%s2886_s9] sm:$0xff]   ;;  %v2645_v24 = vld [vmem:[%s2886_s9 + $0x8] ss:$0 sps:$4 sm:$0xff]   ;;  %v2897_v25 = vld [vmem:[%s2886_s9 + $0xc] sm:$0xff]  }
  0x16   : > { %v333_v27 = vshrl.u32 %v2644_v23, 16  ;;  %v335_v28 = vshll.u32 %v2644_v23, 16  ;;  %v340_v29 = vshll.u32 %v2645_v24, 16  ;;  %v463_v30 = vrot.slane %v2644_v23, 1  ;;  %v2647_v31 = vld [vmem:[%s2886_s9 + $0x14] ss:$0 sps:$4 sm:$0xff]  }
  0x17   : > { %v464_v32 = vrot.slane %v2645_v24, 1  ;;  %v466_v33 = vrot.slane %v2897_v25, 1  ;;  %v467_v36 = vrot.slane %v2647_v31, 1  ;;  %v345_v40 = vshrl.u32 %v2897_v25, 16  ;;  %v2931_v53 = vld [vmem:[%s2886_s9 + $0x18] sm:$0xff]   ;;  %v2939_v57 = vld [vmem:[%s2886_s9 + $0x24] sm:$0xff]  }
  0x18   : > { %2153 = vmatpush3.bf16.msra.mxu0 %v2631_v11  ;;  %2393 = vmatpush3.bf16.msra.mxu1 %v2630_v10  ;;  %v337_v34 = vrot.slane %v335_v28, 1  ;;  %v342_v35 = vrot.slane %v340_v29, 1  ;;  %v347_v43 = vshll.u32 %v2897_v25, 16  ;;  %v352_v46 = vshll.u32 %v2647_v31, 16  ;;  %v2655_v54 = vld [vmem:[%s2886_s9 + $0x20] ss:$0 sps:$4 sm:$0xff]  }
  0x19   : > { %2154 = vmatprep.subr.bf16.mxu0 %v2632_v12  ;;  %2394 = vmatprep.subr.bf16.mxu1 %v2633_v13  ;;  %v465_v38 = vsel %vm462_vm0, %v463_v30, %v464_v32  ;;  %v2917_v44 = vsel %vm462_vm0, %v466_v33, %v467_v36  ;;  %v469_v56 = vrot.slane %v2931_v53, 1  ;;  %v2657_v58 = vld [vmem:[%s2886_s9 + $0x2c] ss:$0 sps:$4 sm:$0xff]   ;;  %v470_v59 = vrot.slane %v2655_v54, 1  ;;  %v2663_v9 = vld [vmem:[%s3375_s1 + $0xd8] sm:$0xff]   ;;  %v2974_v12 = vld [vmem:[%s2886_s9 + $0x30] sm:$0xff]  }
  0x1a   : > { %v338_v41 = vor.u32 %v337_v34, %v333_v27  ;;  %2402 = vmatprep.mubr.bf16.mxu1 %v465_v38  ;;  %v349_v49 = vrot.slane %v347_v43, 1  ;;  %v354_v51 = vrot.slane %v352_v46, 1  ;;  %v472_v61 = vrot.slane %v2939_v57, 1  ;;  %v2661_v5 = vld [vmem:[%s3375_s1 + $0x188] sm:$0xff]   ;;  %v2669_v24 = vld [vmem:[%s3375_s1 + $0x1d0] sm:$0xff]  }
  0x1b   : > { %v473_v62 = vrot.slane %v2657_v58, 1  ;;  %v2948_v63 = vsel %vm462_vm0, %v469_v56, %v470_v59  ;;  %v357_v1 = vshrl.u32 %v2931_v53, 16  ;;  %v359_v4 = vshll.u32 %v2931_v53, 16  ;;  %v2671_v28 = vld [vmem:[%s3375_s1 + $0x190] sm:$0xff]   ;;  %v2672_v30 = vld [vmem:[%s3375_s1 + $0x128] sm:$0xff]  }
  0x1c   : > { %2155 = vmatpush3.bf16.msra.mxu0 %v2634_v14  ;;  %2395 = vmatpush3.bf16.msra.mxu1 %v2633_v13  ;;  %v343_v47 = vsel %vm331_vm1, %v338_v41, %v342_v35  ;;  %v350_v52 = vor.u32 %v349_v49, %v345_v40  ;;  %v364_v6 = vshll.u32 %v2655_v54, 16  ;;  %v2977_v13 = vld [vmem:[%s2886_s9 + $0x38] ss:$0 sps:$4 sm:$0xff]   ;;  %v369_v14 = vshrl.u32 %v2939_v57, 16  ;;  %v2673_v32 = vld [vmem:[%s3375_s1 + $0xe8] sm:$0xff]   ;;  %v2678_v43 = vld [vmem:[%s3375_s1 + $0x130] sm:$0xff]  }
  0x1d   : > { %2156 = vmatprep.subr.bf16.mxu0 %v2635_v15  ;;  %2396 = vmatprep.subr.bf16.mxu1 %v2636_v16  ;;  %v2956_v2 = vsel %vm462_vm0, %v472_v61, %v473_v62  ;;  %v361_v8 = vrot.slane %v359_v4, 1  ;;  %v371_v29 = vshll.u32 %v2939_v57, 16  ;;  %v376_v31 = vshll.u32 %v2657_v58, 16  ;;  %v3023_v35 = vld [vmem:[%s2886_s9 + $0x48] sm:$0xff]   ;;  %v3031_v40 = vld [vmem:[%s2886_s9 + $0x5c] ss:$0 sps:$4 sm:$0xff]  }
  0x1e   : > { %727 = vmatprep.mubr.bf16.mxu0 %v343_v47  ;;  %v2935_v55 = vsel %vm331_vm1, %v350_v52, %v354_v51  ;;  %v366_v10 = vrot.slane %v364_v6, 1  ;;  %v481_v38 = vrot.slane %v3023_v35, 1  ;;  %v485_v46 = vrot.slane %v3031_v40, 1  ;;  %v2680_v51 = vld [vmem:[%s3375_s1 + $0xf0] sm:$0xff]   ;;  %v2681_v54 = vld [vmem:[%s3375_s1 + $0x198] sm:$0xff]  }
  0x1f   : > { %v362_v11 = vor.u32 %v361_v8, %v357_v1  ;;  %v373_v33 = vrot.slane %v371_v29, 1  ;;  %v378_v34 = vrot.slane %v376_v31, 1  ;;  %v381_v49 = vshrl.u32 %v2974_v12, 16  ;;  %v2682_v58 = vld [vmem:[%s3375_s1 + $0x138] sm:$0xff]   ;;  %v2687_v8 = vld [vmem:[%s3375_s1 + $0x148] sm:$0xff]  }
  0x20   : > { %2157 = vmatpush3.bf16.msra.mxu0 %v2637_v17  ;;  %2397 = vmatpush3.bf16.msra.mxu1 %v2636_v16  ;;  %v475_v16 = vrot.slane %v2974_v12, 1  ;;  %v476_v17 = vrot.slane %v2977_v13, 1  ;;  %v383_v52 = vshll.u32 %v2974_v12, 16  ;;  %v388_v56 = vshll.u32 %v2977_v13, 16  ;;  %v2689_v13 = vld [vmem:[%s3375_s1 + $0x1a8] sm:$0xff]  }
  0x21   : > { %2158 = vmatprep.subr.bf16.mxu0 %v2638_v18  ;;  %2398 = vmatprep.subr.bf16.mxu1 %v2639_v19  ;;  %v2981_v15 = vsel %vm331_vm1, %v362_v11, %v366_v10  ;;  %v2986_v18 = vld [vmem:[%s2886_s9 + $0x3c] sm:$0xff]   ;;  %v374_v36 = vor.u32 %v373_v33, %v369_v14  ;;  %v2688_v10 = vld [vmem:[%s3375_s1 + $0x1e8] sm:$0xff]   ;;  %v405_v14 = vshrl.u32 %v3023_v35, 16  ;;  %v424_v31 = vshll.u32 %v3031_v40, 16 }
  0x22   : > { %v385_v59 = vrot.slane %v383_v52, 1  ;;  %v390_v61 = vrot.slane %v388_v56, 1  ;;  %v393_v1 = vshrl.u32 %v2986_v18, 16  ;;  %v2693_v33 = vld [vmem:[%s3375_s1 + $0x158] sm:$0xff]   ;;  %v2696_v40 = vld [vmem:[%s3375_s1 + $0x160] sm:$0xff]  }
  0x23   : > { %v3034_v41 = vsel %vm331_vm1, %v374_v36, %v378_v34  ;;  %v2694_v34 = vld [vmem:[%s3375_s1 + $0x1f8] sm:$0xff]   ;;  %v3177_v52 = vld [vmem:[%s2886_s9 + $0x68] ss:$0 sps:$4 sm:$0xff]  }
  0x24   : > { %2159 = vmatpush3.bf16.msra.mxu0 %v2640_v20  ;;  %2399 = vmatpush3.bf16.msra.mxu1 %v2639_v19  ;;  %v2989_v19 = vld [vmem:[%s2886_s9 + $0x44] ss:$0 sps:$4 sm:$0xff]   ;;  %v386_v62 = vor.u32 %v385_v59, %v381_v49  ;;  %v2699_v49 = vld [vmem:[%s3375_s1 + $0x208] sm:$0xff]  }
  0x25   : > { %2160 = vmatprep.subr.bf16.mxu0 %v2641_v21  ;;  %2400 = vmatprep.subr.bf16.mxu1 %v2642_v22  ;;  %v2668_v20 = vld [vmem:[%s3375_s1 + $0x120] sm:$0xff]   ;;  %v2996_v21 = vsel %vm462_vm0, %v475_v16, %v476_v17  ;;  %v400_v6 = vshll.u32 %v2989_v19, 16  ;;  %v407_v16 = vshll.u32 %v3023_v35, 16 }
  0x26   : > { %v3079_v4 = vsel %vm331_vm1, %v386_v62, %v390_v61  ;;  %v2706_v61 = vld [vmem:[%s3375_s1 + $0x220] sm:$0xff]  }
  0x28   : > { %2161 = vmatpush3.bf16.msra.mxu0 %v2643_v26  ;;  %2401 = vmatpush3.bf16.msra.mxu1 %v2642_v22  ;;  %v478_v22 = vrot.slane %v2986_v18, 1  ;;  %v2670_v26 = vld [vmem:[%s3375_s1 + $0xe0] sm:$0xff]  }
  0x29   : > { %2226 = vmatprep.subr.bf16.mxu1 %v2648_v37  ;;  %2306 = vmatprep.subr.bf16.mxu0 %v2649_v39  ;;  %v2675_v37 = vld [vmem:[%s2886_s9 + $0x50] ss:$0 sps:$4 sm:$0xff]   ;;  %v3028_v39 = vld [vmem:[%s2886_s9 + $0x54] sm:$0xff]  }
  0x2a   : > { %v412_v17 = vshll.u32 %v2675_v37, 16  ;;  %v417_v29 = vshrl.u32 %v3028_v39, 16 }
  0x2b   : > { %728 = vmatmul.mubr.bf16.vlgmr.msra.gmra.mrb[0].mxu0 %v2644_v23  ;;  %2403 = vmatmul.mubr.bf16.vlgmr.msra.gmra.mrb[0].mxu1 %v2917_v44  ;;  %v479_v23 = vrot.slane %v2989_v19, 1 }
  0x2c   : > { %2227 = vmatpush3.bf16.msra.mxu1 %v2650_v42  ;;  %2307 = vmatpush3.bf16.msra.mxu0 %v2651_v45  ;;  %v482_v42 = vrot.slane %v2675_v37, 1  ;;  %v484_v45 = vrot.slane %v3028_v39, 1  ;;  %v426_v37 = vrot.slane %v424_v31, 1 }
  0x2d   : > { %2228 = vmatprep.subr.bf16.mxu1 %v2652_v48  ;;  %735 = vmatprep.mubr.bf16.mxu0 %v2935_v55  ;;  %v3009_v27 = vsel %vm462_vm0, %v478_v22, %v479_v23  ;;  %v2679_v48 = vld [vmem:[%s3375_s1 + $0x1d8] sm:$0xff]   ;;  %v2690_v22 = vld [vmem:[%s3375_s1 + $0x150] sm:$0xff]  }
  0x2e   : > { %2406 = vmatprep.mubr.bf16.mxu1 %v2948_v63  ;;  %2308 = vmatprep.subr.bf16.mxu0 %v2659_v0  ;;  %v3043_v47 = vsel %vm462_vm0, %v481_v38, %v482_v42  ;;  %v2684_v0 = vld [vmem:[%s3375_s1 + $0x140] sm:$0xff]   ;;  %v2691_v23 = vld [vmem:[%s3375_s1 + $0x1f0] sm:$0xff]   ;;  %v2695_v38 = vld [vmem:[%s3375_s1 + $0x1b8] sm:$0xff]  }
  0x2f   : > { %v3138_v42 = vld [vmem:[%s3375_s1 + $0x200] sm:$0xff]  }
  0x30   : > { %2229 = vmatpush3.bf16.msra.mxu1 %v2653_v50  ;;  %2309 = vmatpush3.bf16.msra.mxu0 %v2661_v5  ;;  %v3052_v50 = vsel %vm462_vm0, %v484_v45, %v485_v46  ;;  %v2686_v5 = vld [vmem:[%s3375_s1 + $0x1a0] sm:$0xff]   ;;  %v2698_v45 = vld [vmem:[%s3375_s1 + $0x168] sm:$0xff]   ;;  %v2700_v46 = vld [vmem:[%s3375_s1 + $0x170] sm:$0xff]  }
  0x31   : > { %2230 = vmatprep.subr.bf16.mxu1 %v2658_v60  ;;  %2310 = vmatprep.subr.bf16.mxu0 %v2669_v24  ;;  %v2683_v60 = vld [vmem:[%s3375_s1 + $0xf8] sm:$0xff]   ;;  %v419_v24 = vshll.u32 %v3028_v39, 16 }
  0x33   : > { %736 = vmatmul.mubr.bf16.gmra.mrb[4].mxu0 %v2897_v25  ;;  %2407 = vmatmul.mubr.bf16.gmra.mrb[4].mxu1 %v2956_v2 }
  0x34   : > { %2231 = vmatpush3.bf16.msra.mxu1 %v2660_v3  ;;  %743 = vmatprep.mubr.bf16.mxu0 %v2981_v15  ;;  %v2685_v3 = vld [vmem:[%s3375_s1 + $0x1e0] sm:$0xff]  }
  0x35   : > { %2232 = vmatprep.subr.bf16.mxu1 %v2662_v7  ;;  %2410 = vmatprep.mubr.bf16.mxu1 %v2996_v21 }
  0x36   : > { %2311 = vmatpush3.bf16.msra.mxu0 %v2671_v28  ;;  %v2692_v28 = vld [vmem:[%s3375_s1 + $0x1b0] sm:$0xff]  }
  0x37   : > { %2312 = vmatprep.subr.bf16.mxu0 %v2679_v48  ;;  %v2704_v48 = vld [vmem:[%s3375_s1 + $0x178] sm:$0xff]  }
  0x38   : > { %2233 = vmatpush3.bf16.msra.mxu1 %v2663_v9  ;;  %v402_v9 = vrot.slane %v400_v6, 1 }
  0x39   : > { %2234 = vmatprep.subr.bf16.mxu1 %v2668_v20  ;;  %v414_v20 = vrot.slane %v412_v17, 1 }
  0x3a   : > { %2313 = vmatpush3.bf16.msra.mxu0 %v2681_v54 }
  0x3b   : > { %744 = vmatmul.mubr.bf16.gmra.mrb[8].mxu0 %v2931_v53  ;;  %2411 = vmatmul.mubr.bf16.gmra.mrb[8].mxu1 %v3009_v27 }
  0x3c   : > { %2235 = vmatpush3.bf16.msra.mxu1 %v2670_v26  ;;  %751 = vmatprep.mubr.bf16.mxu0 %v3034_v41 }
  0x3d   : > { %2236 = vmatprep.subr.bf16.mxu1 %v2672_v30  ;;  %2414 = vmatprep.mubr.bf16.mxu1 %v3043_v47  ;;  %v421_v30 = vrot.slane %v419_v24, 1 }
  0x3e   : > { %2314 = vmatprep.subr.bf16.mxu0 %v2685_v3 }
  0x3f   : > { %2315 = vmatpush3.bf16.msra.mxu0 %v2686_v5  ;;  %v422_v36 = vor.u32 %v421_v30, %v417_v29 }
  0x40   : > { %2237 = vmatpush3.bf16.msra.mxu1 %v2673_v32  ;;  %2316 = vmatprep.subr.bf16.mxu0 %v2688_v10 }
  0x41   : > { %2238 = vmatprep.subr.bf16.mxu1 %v2678_v43  ;;  %v3141_v43 = vsel %vm331_vm1, %v422_v36, %v426_v37 }
  0x43   : > { %752 = vmatmul.mubr.bf16.gmra.mrb[12].mxu0 %v2939_v57  ;;  %2415 = vmatmul.mubr.bf16.gmra.mrb[12].mxu1 %v3052_v50 }
  0x44   : > { %2239 = vmatpush3.bf16.msra.mxu1 %v2680_v51  ;;  %1130 = vmatprep.mubr.bf16.mxu1 %v2935_v55  ;;  %v395_v55 = vshll.u32 %v2986_v18, 16  ;;  %v3165_v51 = vld [vmem:[%s2886_s9 + $0x60] sm:$0xff]  }
  0x45   : > { %2240 = vmatprep.subr.bf16.mxu1 %v2682_v58  ;;  %759 = vmatprep.mubr.bf16.mxu0 %v3079_v4  ;;  %v431_v54 = vshll.u32 %v3165_v51, 16  ;;  %v436_v58 = vshll.u32 %v3177_v52, 16 }
  0x46   : > { %v397_v7 = vrot.slane %v395_v55, 1  ;;  %2317 = vmatpush3.bf16.msra.mxu0 %v2689_v13 }
  0x47   : > { %2318 = vmatprep.subr.bf16.mxu0 %v2691_v23  ;;  %v433_v56 = vrot.slane %v431_v54, 1 }
  0x48   : > { %2241 = vmatpush3.bf16.msra.mxu1 %v2683_v60  ;;  %v398_v11 = vor.u32 %v397_v7, %v393_v1  ;;  %v438_v60 = vrot.slane %v436_v58, 1  ;;  %v2711_v1 = vld [vmem:[%s3375_s1 + $0x238] sm:$0xff]   ;;  %v488_v7 = vrot.slane %v3177_v52, 1 }
  0x49   : > { %2418 = vmatprep.subr.bf16.mxu1 %v2684_v0 }
  0x4a   : > { %v3101_v19 = vsel %vm331_vm1, %v398_v11, %v402_v9  ;;  %2319 = vmatpush3.bf16.msra.mxu0 %v2692_v28 }
  0x4b   : > { %760 = vmatmul.mubr.bf16.gmra.mrb[16].mxu0 %v2974_v12  ;;  %1131 = vmatmul.mubr.bf16.vlgmr.msra.gmra.mrb[16].mxu1 %v2897_v25  ;;  %v409_v25 = vrot.slane %v407_v16, 1 }
  0x4c   : > { %2419 = vmatpush3.bf16.msra.mxu1 %v2684_v0  ;;  %1138 = vmatprep.mubr.bf16.mxu1 %v2981_v15  ;;  %v2708_v0 = vld [vmem:[%s3375_s1 + $0x230] sm:$0xff]  }
  0x4d   : > { %2420 = vmatprep.subr.bf16.mxu1 %v2687_v8  ;;  %767 = vmatprep.mubr.bf16.mxu0 %v3101_v19  ;;  %v410_v26 = vor.u32 %v409_v25, %v405_v14 }
  0x4e   : > { %2320 = vmatprep.subr.bf16.mxu0 %v2694_v34 }
  0x4f   : > { %v3117_v32 = vsel %vm331_vm1, %v410_v26, %v414_v20  ;;  %2321 = vmatpush3.bf16.msra.mxu0 %v2695_v38 }
  0x50   : > { %2421 = vmatpush3.bf16.msra.mxu1 %v2687_v8  ;;  %2450 = vmatprep.subr.bf16.mxu0 %v3138_v42 }
  0x51   : > { %2422 = vmatprep.subr.bf16.mxu1 %v2690_v22 }
  0x53   : > { %768 = vmatmul.mubr.bf16.gmra.mrb[20].mxu0 %v2986_v18  ;;  %1139 = vmatmul.mubr.bf16.gmra.mrb[20].mxu1 %v2931_v53 }
  0x54   : > { %775 = vmatprep.mubr.bf16.mxu0 %v3117_v32  ;;  %1146 = vmatprep.mubr.bf16.mxu1 %v3034_v41 }
  0x55   : > { %2423 = vmatpush3.bf16.msra.mxu1 %v2690_v22 }
  0x56   : > { %2424 = vmatprep.subr.bf16.mxu1 %v2693_v33 }
  0x59   : > { %2425 = vmatpush3.bf16.msra.mxu1 %v2693_v33 }
  0x5a   : > { %2426 = vmatprep.subr.bf16.mxu1 %v2696_v40 }
  0x5b   : > { %776 = vmatmul.mubr.bf16.gmra.mrb[24].mxu0 %v3023_v35  ;;  %1147 = vmatmul.mubr.bf16.gmra.mrb[24].mxu1 %v2939_v57 }
  0x5c   : > { %783 = vmatprep.mubr.bf16.mxu0 %v3141_v43  ;;  %1154 = vmatprep.mubr.bf16.mxu1 %v3079_v4 }
  0x5d   : > { %2427 = vmatpush3.bf16.msra.mxu1 %v2696_v40 }
  0x5e   : > { %2428 = vmatprep.subr.bf16.mxu1 %v2698_v45 }
  0x61   : > { %2429 = vmatpush3.bf16.msra.mxu1 %v2698_v45 }
  0x62   : > { %2430 = vmatprep.subr.bf16.mxu1 %v2700_v46 }
  0x63   : > { %784 = vmatmul.mubr.bf16.gmra.mrb[28].mxu0 %v3028_v39  ;;  %1155 = vmatmul.mubr.bf16.gmra.mrb[28].mxu1 %v2974_v12 }
  0x64   : > { %1565 = vmatprep.mubr.bf16.mxu0 %v2981_v15  ;;  %1162 = vmatprep.mubr.bf16.mxu1 %v3101_v19  ;;  %v2701_v15 = vld [vmem:[%s3375_s1 + $0x210] sm:$0xff]  }
  0x65   : > { %2431 = vmatpush3.bf16.msra.mxu1 %v2700_v46 }
  0x66   : > { %2432 = vmatprep.subr.bf16.mxu1 %v2704_v48 }
  0x69   : > { %2433 = vmatpush3.bf16.msra.mxu1 %v2704_v48 }
  0x6a   : > { %2482 = vmatprep.subr.bf16.mxu1 %v3138_v42 }
  0x6b   : > { %1566 = vmatmul.mubr.bf16.vlgmr.msra.gmra.mrb[32].mxu0 %v2931_v53  ;;  %1163 = vmatmul.mubr.bf16.gmra.mrb[32].mxu1 %v2986_v18  ;;  %v429_v53 = vshrl.u32 %v3165_v51, 16 }
  0x6c   : > { %2451 = vmatpush3.bf16.msra.mxu0 %v3138_v42  ;;  %1170 = vmatprep.mubr.bf16.mxu1 %v3117_v32 }
  0x6d   : > { %1573 = vmatprep.mubr.bf16.mxu0 %v3034_v41  ;;  %2452 = vmatprep.subr.bf16.mxu0 %v2699_v49  ;;  %v2705_v41 = vld [vmem:[%s3375_s1 + $0x218] sm:$0xff]   ;;  %v434_v59 = vor.u32 %v433_v56, %v429_v53 }
  0x6f   : > { %v439_v62 = vsel %vm331_vm1, %v434_v59, %v438_v60 }
  0x70   : > { %2453 = vmatpush3.bf16.msra.mxu0 %v2699_v49 }
  0x71   : > { %2454 = vmatprep.subr.bf16.mxu0 %v2701_v15 }
  0x73   : > { %1574 = vmatmul.mubr.bf16.gmra.mrb[36].mxu0 %v2939_v57  ;;  %1171 = vmatmul.mubr.bf16.gmra.mrb[36].mxu1 %v3023_v35  ;;  %v2707_v57 = vld [vmem:[%s3375_s1 + $0x228] sm:$0xff]  }
  0x74   : > { %1581 = vmatprep.mubr.bf16.mxu0 %v3079_v4  ;;  %1178 = vmatprep.mubr.bf16.mxu1 %v3141_v43 }
  0x75   : > { %2455 = vmatpush3.bf16.msra.mxu0 %v2701_v15 }
  0x76   : > { %2456 = vmatprep.subr.bf16.mxu0 %v2705_v41 }
  0x79   : > { %2457 = vmatpush3.bf16.msra.mxu0 %v2705_v41 }
  0x7a   : > { %2458 = vmatprep.subr.bf16.mxu0 %v2706_v61 }
  0x7b   : > { %1582 = vmatmul.mubr.bf16.gmra.mrb[40].mxu0 %v2974_v12  ;;  %1179 = vmatmul.mubr.bf16.gmra.mrb[40].mxu1 %v3028_v39  ;;  %v2709_v12 = vld [vmem:[%s2886_s9 + $0x6c] sm:$0xff]  }
  0x7c   : > { %1589 = vmatprep.mubr.bf16.mxu0 %v3101_v19  ;;  %1186 = vmatprep.mubr.bf16.mxu1 %v439_v62  ;;  %v443_v3 = vshll.u32 %v2709_v12, 16  ;;  %v441_v55 = vshrl.u32 %v2709_v12, 16  ;;  %v490_v9 = vrot.slane %v2709_v12, 1 }
  0x7d   : > { %2459 = vmatpush3.bf16.msra.mxu0 %v2706_v61 }
  0x7e   : > { %2460 = vmatprep.subr.bf16.mxu0 %v2707_v57 }
  0x81   : > { %2461 = vmatpush3.bf16.msra.mxu0 %v2707_v57 }
  0x82   : > { %2462 = vmatprep.subr.bf16.mxu0 %v2708_v0 }
  0x83   : > { %1590 = vmatmul.mubr.bf16.gmra.mrb[44].mxu0 %v2986_v18  ;;  %1187 = vmatmul.mubr.bf16.gmra.mrb[44].mxu1 %v3165_v51  ;;  %v2710_v18 = vld [vmem:[%s2886_s9 + $0x74] ss:$0 sps:$4 sm:$0xff]  }
  0x84   : > { %1597 = vmatprep.mubr.bf16.mxu0 %v3117_v32  ;;  %2434 = vmatprep.mubr.bf16.mxu1 %v2917_v44  ;;  %v445_v44 = vrot.slane %v443_v3, 1  ;;  %v448_v4 = vshll.u32 %v2710_v18, 16  ;;  %v491_v10 = vrot.slane %v2710_v18, 1 }
  0x85   : > { %2463 = vmatpush3.bf16.msra.mxu0 %v2708_v0 }
  0x86   : > { %2464 = vmatprep.subr.bf16.mxu0 %v2711_v1  ;;  %v450_v5 = vrot.slane %v448_v4, 1  ;;  %v492_v11 = vsel %vm462_vm0, %v490_v9, %v491_v10 }
  0x89   : > { %2465 = vmatpush3.bf16.msra.mxu0 %v2711_v1 }
  0x8b   : > { %1598 = vmatmul.mubr.bf16.gmra.mrb[48].mxu0 %v3023_v35  ;;  %2435 = vmatmul.mubr.bf16.vlgmr.msra.gmra.mrb[0].mxu1 %v2948_v63  ;;  %v446_v35 = vor.u32 %v445_v44, %v441_v55 }
  0x8c   : > { %1605 = vmatprep.mubr.bf16.mxu0 %v3141_v43  ;;  %2490 = vmatpush3.bf16.msra.mxu1 %v3138_v42 }
  0x8d   : > { %2438 = vmatprep.mubr.bf16.mxu1 %v2956_v2  ;;  %2483 = vmatprep.subr.bf16.mxu1 %v2699_v49  ;;  %v451_v6 = vsel %vm331_vm1, %v446_v35, %v450_v5 }
  0x90   : > { %2491 = vmatpush3.bf16.msra.mxu1 %v2699_v49 }
  0x91   : > { %2484 = vmatprep.subr.bf16.mxu1 %v2701_v15 }
  0x93   : > { %1606 = vmatmul.mubr.bf16.gmra.mrb[52].mxu0 %v3028_v39  ;;  %2439 = vmatmul.mubr.bf16.gmra.mrb[4].mxu1 %v2996_v21  ;;  %v487_v39 = vrot.slane %v3165_v51, 1 }
  0x94   : > { %1613 = vmatprep.mubr.bf16.mxu0 %v439_v62  ;;  %2492 = vmatpush3.bf16.msra.mxu1 %v2701_v15 }
  0x95   : > { %2442 = vmatprep.mubr.bf16.mxu1 %v3009_v27  ;;  %2485 = vmatprep.subr.bf16.mxu1 %v2705_v41  ;;  %v489_v8 = vsel %vm462_vm0, %v487_v39, %v488_v7 }
  0x98   : > { %2493 = vmatpush3.bf16.msra.mxu1 %v2705_v41 }
  0x99   : > { %2486 = vmatprep.subr.bf16.mxu1 %v2706_v61 }
  0x9b   : > { %1614 = vmatmul.mubr.bf16.gmra.mrb[56].mxu0 %v3165_v51  ;;  %2443 = vmatmul.mubr.bf16.gmra.mrb[8].mxu1 %v3043_v47 }
  0x9c   : > { %1621 = vmatprep.mubr.bf16.mxu0 %v451_v6  ;;  %2494 = vmatpush3.bf16.msra.mxu1 %v2706_v61 }
  0x9d   : > { %2446 = vmatprep.mubr.bf16.mxu1 %v3052_v50  ;;  %2487 = vmatprep.subr.bf16.mxu1 %v2707_v57 }
  0xa0   : > { %2495 = vmatpush3.bf16.msra.mxu1 %v2707_v57 }
  0xa1   : > { %2488 = vmatprep.subr.bf16.mxu1 %v2708_v0 }
  0xa3   : > { %1622 = vmatmul.mubr.bf16.gmra.mrb[60].mxu0 %v2709_v12  ;;  %2447 = vmatmul.mubr.bf16.gmra.mrb[12].mxu1 %v489_v8 }
  0xa4   : > { %2466 = vmatprep.mubr.bf16.mxu0 %v2948_v63  ;;  %2496 = vmatpush3.bf16.msra.mxu1 %v2708_v0 }
  0xa5   : > { %2474 = vmatprep.mubr.bf16.mxu1 %v3043_v47  ;;  %2489 = vmatprep.subr.bf16.mxu1 %v2711_v1 }
  0xa8   : > { %2497 = vmatpush3.bf16.msra.mxu1 %v2711_v1 }
  0xab   : > { %2467 = vmatmul.mubr.bf16.vlgmr.msra.gmra.mrb[64].mxu0 %v2956_v2  ;;  %2475 = vmatmul.mubr.bf16.vlgmr.msra.gmra.mrb[8].mxu1 %v3052_v50 }
  0xac   : > { %2470 = vmatprep.mubr.bf16.mxu0 %v2996_v21  ;;  %2478 = vmatprep.mubr.bf16.mxu1 %v489_v8 }
  0xb3   : > { %2471 = vmatmul.mubr.bf16.gmra.mrb[68].mxu0 %v3009_v27  ;;  %2479 = vmatmul.mubr.bf16.gmra.mrb[12].mxu1 %v492_v11 }
  0xfe   : > { %v2162_v63 = vpop.f32.mrb[0].mxu0 }
  0xff   : > { %v2163_v13 = vpop.f32.mrb[1].mxu0 }
 0x100   : > { %v2164_v14 = vadd.f32 %v2163_v13, %v2162_v63  ;;  %v2165_v47 = vpop.f32.mrb[2].mxu0 }
 0x101   : > { %v2166_v16 = vpop.f32.mrb[3].mxu0 }
 0x102   : > { %v2167_v17 = vadd.f32 %v2166_v16, %v2165_v47 }
 0x106   : > { %v2168_v19 = vpop.f32.mrb[4].mxu0 }
 0x107   : > { %v2169_v2 = vpop.f32.mrb[5].mxu0 }
 0x108   : > { %v2170_v25 = vadd.f32 %v2169_v2, %v2168_v19  ;;  %v2171_v50 = vpop.f32.mrb[6].mxu0 }
 0x109   : > { %v2172_v20 = vpop.f32.mrb[7].mxu0 }
 0x10a   : > { %v2173_v21 = vadd.f32 %v2172_v20, %v2171_v50 }
 0x10e   : > { %v2174_v22 = vpop.f32.mrb[8].mxu0 }
 0x10f   : > { %v2175_v23 = vpop.f32.mrb[9].mxu0 }
 0x110   : > { %v2176_v24 = vadd.f32 %v2175_v23, %v2174_v22  ;;  %v2177_v26 = vpop.f32.mrb[10].mxu0 }
 0x111   : > { %v2178_v28 = vpop.f32.mrb[11].mxu0 }
 0x112   : > { %v2179_v29 = vadd.f32 %v2178_v28, %v2177_v26 }
 0x116   : > { %v2180_v27 = vpop.f32.mrb[12].mxu0 }
 0x117   : > { %v2181_v30 = vpop.f32.mrb[13].mxu0 }
 0x118   : > { %v2182_v31 = vadd.f32 %v2181_v30, %v2180_v27  ;;  %v2183_v32 = vpop.f32.mrb[14].mxu0 }
 0x119   : > { %v2184_v33 = vpop.f32.mrb[15].mxu0 }
 0x11a   : > { %v2185_v34 = vadd.f32 %v2184_v33, %v2183_v32 }
 0x11e   : > { %v2186_v36 = vpop.f32.mrb[16].mxu0  ;;  %v2242_v37 = vpop.f32.mrb[16].mxu1 }
 0x11f   : > { %v2187_v38 = vpop.f32.mrb[17].mxu0  ;;  %v2243_v42 = vpop.f32.mrb[17].mxu1 }
 0x120   : > { %v3233_v40 = vadd.f32 %v2187_v38, %v2186_v36  ;;  %v2189_v43 = vpop.f32.mrb[18].mxu0  ;;  %v2244_v45 = vadd.f32 %v2243_v42, %v2242_v37  ;;  %v2245_v46 = vpop.f32.mrb[18].mxu1 }
 0x121   : > { %v2190_v48 = vpop.f32.mrb[19].mxu0  ;;  %v2246_v51 = vpop.f32.mrb[19].mxu1 }
 0x122   : > { %v2191_v49 = vadd.f32 %v2190_v48, %v2189_v43  ;;  %v2247_v15 = vadd.f32 %v2246_v51, %v2245_v46  ;;  %v3235_v52 = vadd.f32 %v2244_v45, %v2164_v14 }
 0x124   : > { %v3237_v54 = vadd.f32 %v2247_v15, %v2167_v17 }
 0x126   : > { %v2192_v53 = vpop.f32.mrb[20].mxu0  ;;  %v2248_v56 = vpop.f32.mrb[20].mxu1 }
 0x127   : > { %v2193_v58 = vpop.f32.mrb[21].mxu0  ;;  %v2249_v59 = vpop.f32.mrb[21].mxu1 }
 0x128   : > { %v3239_v41 = vadd.f32 %v2193_v58, %v2192_v53  ;;  %v2195_v60 = vpop.f32.mrb[22].mxu0  ;;  %v2250_v61 = vadd.f32 %v2249_v59, %v2248_v56  ;;  %v2251_v62 = vpop.f32.mrb[22].mxu1 }
 0x129   : > { %v2196_v57 = vpop.f32.mrb[23].mxu0  ;;  %v2252_v1 = vpop.f32.mrb[23].mxu1 }
 0x12a   : > { %v2197_v0 = vadd.f32 %v2196_v57, %v2195_v60  ;;  %v2253_v12 = vadd.f32 %v2252_v1, %v2251_v62  ;;  %v3241_v18 = vadd.f32 %v2250_v61, %v2170_v25 }
 0x12c   : > { %v3243_v3 = vadd.f32 %v2253_v12, %v2173_v21 }
 0x12e   : > { %v2198_v55 = vpop.f32.mrb[24].mxu0  ;;  %v2254_v44 = vpop.f32.mrb[24].mxu1 }
 0x12f   : > { %v2199_v4 = vpop.f32.mrb[25].mxu0  ;;  %v2255_v5 = vpop.f32.mrb[25].mxu1 }
 0x130   : > { %v3245_v35 = vadd.f32 %v2199_v4, %v2198_v55  ;;  %v2201_v6 = vpop.f32.mrb[26].mxu0  ;;  %v2256_v39 = vadd.f32 %v2255_v5, %v2254_v44  ;;  %v2257_v7 = vpop.f32.mrb[26].mxu1 }
 0x131   : > { %v2202_v8 = vpop.f32.mrb[27].mxu0  ;;  %v2258_v10 = vpop.f32.mrb[27].mxu1 }
 0x132   : > { %v2203_v9 = vadd.f32 %v2202_v8, %v2201_v6  ;;  %v2259_v11 = vadd.f32 %v2258_v10, %v2257_v7  ;;  %v3247_v63 = vadd.f32 %v2256_v39, %v2176_v24 }
 0x134   : > { %v3249_v13 = vadd.f32 %v2259_v11, %v2179_v29 }
 0x136   : > { %v2204_v14 = vpop.f32.mrb[28].mxu0  ;;  %v2260_v47 = vpop.f32.mrb[28].mxu1 }
 0x137   : > { %v2205_v16 = vpop.f32.mrb[29].mxu0  ;;  %v2261_v19 = vpop.f32.mrb[29].mxu1 }
 0x138   : > { %v3251_v17 = vadd.f32 %v2205_v16, %v2204_v14  ;;  %v2207_v2 = vpop.f32.mrb[30].mxu0  ;;  %v2262_v25 = vadd.f32 %v2261_v19, %v2260_v47  ;;  %v2263_v50 = vpop.f32.mrb[30].mxu1 }
 0x139   : > { %v2208_v20 = vpop.f32.mrb[31].mxu0  ;;  %v2264_v22 = vpop.f32.mrb[31].mxu1 }
 0x13a   : > { %v2209_v21 = vadd.f32 %v2208_v20, %v2207_v2  ;;  %v2265_v23 = vadd.f32 %v2264_v22, %v2263_v50  ;;  %v3253_v26 = vadd.f32 %v2262_v25, %v2182_v31 }
 0x13c   : > { %v3255_v28 = vadd.f32 %v2265_v23, %v2185_v34 }
 0x13e   : > { %v2322_v24 = vpop.f32.mrb[32].mxu0  ;;  %v2266_v29 = vpop.f32.mrb[32].mxu1 }
 0x13f   : > { %v2323_v27 = vpop.f32.mrb[33].mxu0  ;;  %v2267_v30 = vpop.f32.mrb[33].mxu1 }
 0x140   : > { %v3257_v32 = vadd.f32 %v2323_v27, %v2322_v24  ;;  %v2325_v33 = vpop.f32.mrb[34].mxu0  ;;  %v2268_v36 = vadd.f32 %v2267_v30, %v2266_v29  ;;  %v2269_v37 = vpop.f32.mrb[34].mxu1 }
 0x141   : > { %v2326_v38 = vpop.f32.mrb[35].mxu0  ;;  %v2270_v42 = vpop.f32.mrb[35].mxu1 }
 0x142   : > { %v3259_v43 = vadd.f32 %v2326_v38, %v2325_v33  ;;  %v2533_v45 = vadd.f32 %v2268_v36, %v3233_v40  ;;  %v2271_v46 = vadd.f32 %v2270_v42, %v2269_v37 }
 0x144   : > { %v2539_v31 = vadd.f32 %v2271_v46, %v2191_v49 }
 0x146   : > { %v2328_v48 = vpop.f32.mrb[36].mxu0  ;;  %v2272_v34 = vpop.f32.mrb[36].mxu1 }
 0x147   : > { %v2329_v51 = vpop.f32.mrb[37].mxu0  ;;  %v2273_v15 = vpop.f32.mrb[37].mxu1 }
 0x148   : > { %v2330_v53 = vadd.f32 %v2329_v51, %v2328_v48  ;;  %v2331_v56 = vpop.f32.mrb[38].mxu0  ;;  %v2274_v58 = vadd.f32 %v2273_v15, %v2272_v34  ;;  %v2275_v59 = vpop.f32.mrb[38].mxu1 }
 0x149   : > { %v2332_v60 = vpop.f32.mrb[39].mxu0  ;;  %v2276_v61 = vpop.f32.mrb[39].mxu1 }
 0x14a   : > { %v2333_v62 = vadd.f32 %v2332_v60, %v2331_v56  ;;  %v3263_v57 = vadd.f32 %v2274_v58, %v3239_v41  ;;  %v2277_v1 = vadd.f32 %v2276_v61, %v2275_v59 }
 0x14c   : > { %v3265_v12 = vadd.f32 %v2277_v1, %v2197_v0 }
 0x14e   : > { %v2334_v40 = vpop.f32.mrb[40].mxu0  ;;  %v2278_v55 = vpop.f32.mrb[40].mxu1 }
 0x14f   : > { %v2335_v49 = vpop.f32.mrb[41].mxu0  ;;  %v2279_v44 = vpop.f32.mrb[41].mxu1 }
 0x150   : > { %v2336_v4 = vadd.f32 %v2335_v49, %v2334_v40  ;;  %v2337_v5 = vpop.f32.mrb[42].mxu0  ;;  %v2280_v6 = vadd.f32 %v2279_v44, %v2278_v55  ;;  %v2281_v39 = vpop.f32.mrb[42].mxu1 }
 0x151   : > { %v2338_v7 = vpop.f32.mrb[43].mxu0  ;;  %v2282_v8 = vpop.f32.mrb[43].mxu1 }
 0x152   : > { %v2339_v10 = vadd.f32 %v2338_v7, %v2337_v5  ;;  %v3268_v11 = vadd.f32 %v2280_v6, %v3245_v35  ;;  %v2283_v14 = vadd.f32 %v2282_v8, %v2281_v39 }
 0x154   : > { %v2551_v41 = vadd.f32 %v2283_v14, %v2203_v9 }
 0x156   : > { %v2340_v47 = vpop.f32.mrb[44].mxu0  ;;  %v2284_v16 = vpop.f32.mrb[44].mxu1 }
 0x157   : > { %v2341_v0 = vpop.f32.mrb[45].mxu0  ;;  %v2285_v19 = vpop.f32.mrb[45].mxu1 }
 0x158   : > { %v2342_v2 = vadd.f32 %v2341_v0, %v2340_v47  ;;  %v2343_v25 = vpop.f32.mrb[46].mxu0  ;;  %v2286_v50 = vadd.f32 %v2285_v19, %v2284_v16  ;;  %v2287_v20 = vpop.f32.mrb[46].mxu1 }
 0x159   : > { %v2344_v22 = vpop.f32.mrb[47].mxu0  ;;  %v2288_v23 = vpop.f32.mrb[47].mxu1 }
 0x15a   : > { %v2345_v24 = vadd.f32 %v2344_v22, %v2343_v25  ;;  %v2542_v29 = vadd.f32 %v2286_v50, %v3251_v17  ;;  %v2289_v27 = vadd.f32 %v2288_v23, %v2287_v20  ;;  %v3295_v23 = vld [vmem:[%s3376_s2] ss:$0 sm:$0xff] }
 0x15c   : > { %v2548_v30 = vadd.f32 %v2289_v27, %v2209_v21 }
 0x15e   : > { %v2346_v33 = vpop.f32.mrb[48].mxu0  ;;  %v2436_v35 = vpop.f32.mrb[0].mxu1 }
 0x15f   : > { %v2347_v36 = vpop.f32.mrb[49].mxu0  ;;  %v2499_v9 = vadd.f32 %v3241_v18, %v2436_v35  ;;  %v1229_v37 = vpop.f32.mrb[1].mxu1 }
 0x160   : > { %v2348_v38 = vadd.f32 %v2347_v36, %v2346_v33  ;;  %v2349_v42 = vpop.f32.mrb[50].mxu0  ;;  %v2503_v46 = vadd.f32 %v3235_v52, %v1229_v37  ;;  %v2437_v48 = vpop.f32.mrb[2].mxu1 }
 0x161   : > { %v2350_v34 = vpop.f32.mrb[51].mxu0  ;;  %v2507_v51 = vadd.f32 %v3243_v3, %v2437_v48  ;;  %v1232_v15 = vpop.f32.mrb[3].mxu1  ;;  %v2500_v58 = vadd.f32 %v2499_v9, %v2330_v53 }
 0x162   : > { %v2351_v56 = vadd.f32 %v2350_v34, %v2349_v42  ;;  %v2534_v17 = vadd.f32 %v2533_v45, %v2348_v38  ;;  %v2511_v21 = vadd.f32 %v3237_v54, %v1232_v15  ;;  %v2504_v59 = vadd.f32 %v2503_v46, %v3257_v32 }
 0x163   : > { %v2508_v60 = vadd.f32 %v2507_v51, %v2333_v62 }
 0x164   : > { %v2540_v61 = vadd.f32 %v2539_v31, %v2351_v56  ;;  %v2512_v18 = vadd.f32 %v2511_v21, %v3259_v43 }
 0x166   : > { %v2352_v1 = vpop.f32.mrb[52].mxu0  ;;  %v2440_v40 = vpop.f32.mrb[4].mxu1 }
 0x167   : > { %v2353_v55 = vpop.f32.mrb[53].mxu0  ;;  %v2515_v52 = vadd.f32 %v3253_v26, %v2440_v40  ;;  %v1245_v49 = vpop.f32.mrb[5].mxu1 }
 0x168   : > { %v2354_v44 = vadd.f32 %v2353_v55, %v2352_v1  ;;  %v2355_v3 = vpop.f32.mrb[54].mxu0  ;;  %v2519_v5 = vadd.f32 %v3247_v63, %v1245_v49  ;;  %v2441_v53 = vpop.f32.mrb[6].mxu1 }
 0x169   : > { %v2356_v45 = vpop.f32.mrb[55].mxu0  ;;  %v2523_v54 = vadd.f32 %v3255_v28, %v2441_v53  ;;  %v1248_v6 = vpop.f32.mrb[7].mxu1  ;;  %v2516_v62 = vadd.f32 %v2515_v52, %v2342_v2 }
 0x16a   : > { %v2357_v32 = vadd.f32 %v2356_v45, %v2355_v3  ;;  %v2531_v31 = vadd.f32 %v3263_v57, %v2354_v44  ;;  %v2527_v43 = vadd.f32 %v3249_v13, %v1248_v6  ;;  %v3282_v39 = vadd.f32 %v2519_v5, %v2336_v4 }
 0x16b   : > { %v3285_v7 = vadd.f32 %v2523_v54, %v2345_v24 }
 0x16c   : > { %v2537_v26 = vadd.f32 %v3265_v12, %v2357_v32  ;;  %v3287_v8 = vadd.f32 %v2527_v43, %v2339_v10 }
 0x16e   : > { %v2358_v63 = vpop.f32.mrb[56].mxu0 }
 0x16f   : > { %v2359_v14 = vpop.f32.mrb[57].mxu0 }
 0x170   : > { %v2360_v47 = vadd.f32 %v2359_v14, %v2358_v63  ;;  %v2361_v16 = vpop.f32.mrb[58].mxu0 }
 0x171   : > { %v2362_v28 = vpop.f32.mrb[59].mxu0 }
 0x172   : > { %v2363_v0 = vadd.f32 %v2362_v28, %v2361_v16  ;;  %v2546_v19 = vadd.f32 %v3268_v11, %v2360_v47  ;;  %v3300_v11 = vld [vmem:[%s3377_s3] ss:$0 sm:$0xff] }
 0x174   : > { %v3290_v57 = vadd.f32 %v2551_v41, %v2363_v0 }
 0x176   : > { %v2364_v2 = vpop.f32.mrb[60].mxu0 }
 0x177   : > { %v2365_v13 = vpop.f32.mrb[61].mxu0 }
 0x178   : > { %v2366_v4 = vadd.f32 %v2365_v13, %v2364_v2  ;;  %v2367_v25 = vpop.f32.mrb[62].mxu0 }
 0x179   : > { %v2368_v50 = vpop.f32.mrb[63].mxu0 }
 0x17a   : > { %v2369_v12 = vadd.f32 %v2368_v50, %v2367_v25  ;;  %v2543_v20 = vadd.f32 %v2542_v29, %v2366_v4 }
 0x17c   : > { %v2549_v22 = vadd.f32 %v2548_v30, %v2369_v12 }
 0x17e   : > { %v2468_v10 = vpop.f32.mrb[64].mxu0  ;;  %v2476_v27 = vpop.f32.mrb[8].mxu1 }
 0x17f   : > { %v2501_v24 = vadd.f32 %v2500_v58, %v2468_v10  ;;  %v1664_v33 = vpop.f32.mrb[65].mxu0  ;;  %v2532_v41 = vadd.f32 %v2531_v31, %v2476_v27  ;;  %v1696_v36 = vpop.f32.mrb[9].mxu1 }
 0x180   : > { %v2505_v35 = vadd.f32 %v2504_v59, %v1664_v33  ;;  %v2469_v9 = vpop.f32.mrb[66].mxu0  ;;  %v2535_v30 = vadd.f32 %v2534_v17, %v1696_v36  ;;  %v2477_v38 = vpop.f32.mrb[10].mxu1 }
 0x181   : > { %v1800_v29 = vmul.f32 %v2501_v24, %v3295_v23  ;;  %v2509_v37 = vadd.f32 %v2508_v60, %v2469_v9  ;;  %v1667_v42 = vpop.f32.mrb[67].mxu0  ;;  %v1808_v46 = vmul.f32 %v2532_v41, %v3295_v23  ;;  %v2538_v34 = vadd.f32 %v2537_v26, %v2477_v38  ;;  %v1699_v15 = vpop.f32.mrb[11].mxu1 }
 0x182   : > { %v1798_v48 = vmul.f32 %v2505_v35, %v3295_v23  ;;  %v2513_v51 = vadd.f32 %v2512_v18, %v1667_v42  ;;  %v1806_v58 = vmul.f32 %v2535_v30, %v3295_v23  ;;  %v2541_v59 = vadd.f32 %v2540_v61, %v1699_v15 }
 0x183   : > { %v3306_v56 = vadd.f32 %v3300_v11, %v1800_v29  ;;  %v1801_v21 = vmul.f32 %v2509_v37, %v3295_v23  ;;  %v3311_v17 = vadd.f32 %v3300_v11, %v1808_v46  ;;  %v1809_v1 = vmul.f32 %v2538_v34, %v3295_v23 }
 0x184   : > { %v3314_v60 = vadd.f32 %v3300_v11, %v1798_v48  ;;  %v1799_v40 = vmul.f32 %v2513_v51, %v3295_v23  ;;  %v3320_v55 = vadd.f32 %v3300_v11, %v1806_v58  ;;  %v1807_v49 = vmul.f32 %v2541_v59, %v3295_v23 }
 0x185   : > { %v1839_v18 = vmax.f32 %v3306_v56, 0.0  ;;  %v1824_v52 = vadd.f32 %v3300_v11, %v1801_v21  ;;  %v1847_v61 = vmax.f32 %v3311_v17, 0.0  ;;  %v3327_v3 = vadd.f32 %v3300_v11, %v1809_v1 }
 0x186   : > { %v1837_v44 = vmax.f32 %v3314_v60, 0.0  ;;  %v1822_v5 = vadd.f32 %v3300_v11, %v1799_v40  ;;  %v2472_v53 = vpop.f32.mrb[68].mxu0  ;;  %v1845_v45 = vmax.f32 %v3320_v55, 0.0  ;;  %v1830_v6 = vadd.f32 %v3300_v11, %v1807_v49  ;;  %v2480_v31 = vpop.f32.mrb[12].mxu1 }
 0x187   : > { %v1840_v54 = vmax.f32 %v1824_v52, 0.0  ;;  %v2517_v32 = vadd.f32 %v2516_v62, %v2472_v53  ;;  %v1680_v43 = vpop.f32.mrb[69].mxu0  ;;  %v1848_v26 = vmax.f32 %v3327_v3, 0.0  ;;  %v2544_v14 = vadd.f32 %v2543_v20, %v2480_v31  ;;  %v1712_v16 = vpop.f32.mrb[13].mxu1 }
 0x188   : > { %v1838_v63 = vmax.f32 %v1822_v5, 0.0  ;;  %v2521_v47 = vadd.f32 %v3282_v39, %v1680_v43  ;;  %v2473_v28 = vpop.f32.mrb[70].mxu0  ;;  %v1846_v0 = vmax.f32 %v1830_v6, 0.0  ;;  %v2547_v13 = vadd.f32 %v2546_v19, %v1712_v16  ;;  %v2481_v25 = vpop.f32.mrb[14].mxu1 }
 0x189   : > { %v1804_v2 = vmul.f32 %v2517_v32, %v3295_v23  ;;  %v2525_v4 = vadd.f32 %v3285_v7, %v2473_v28  ;;  %v1683_v50 = vpop.f32.mrb[71].mxu0  ;;  %v1812_v62 = vmul.f32 %v2544_v14, %v3295_v23  ;;  %v2550_v10 = vadd.f32 %v2549_v22, %v2481_v25  ;;  %v1715_v20 = vpop.f32.mrb[15].mxu1 }
 0x18a   : > { %v1802_v12 = vmul.f32 %v2521_v47, %v3295_v23  ;;  %v2529_v24 = vadd.f32 %v3287_v8, %v1683_v50  ;;  %v1810_v27 = vmul.f32 %v2547_v13, %v3295_v23  ;;  %v2553_v19 = vadd.f32 %v3290_v57, %v1715_v20  ;;  %1856 = sbr.rel (%p2142_p6) target bundleno = 401 (0x191), region = 40 }
 0x18b   : > { %v1827_v39 = vadd.f32 %v3300_v11, %v1804_v2  ;;  %v1805_v33 = vmul.f32 %v2525_v4, %v3295_v23  ;;  %v1835_v7 = vadd.f32 %v3300_v11, %v1812_v62  ;;  %v1813_v35 = vmul.f32 %v2550_v10, %v3295_v23 }
 0x18c   : > { %v1825_v41 = vadd.f32 %v3300_v11, %v1802_v12  ;;  %v1803_v36 = vmul.f32 %v2529_v24, %v3295_v23  ;;  %v1833_v8 = vadd.f32 %v3300_v11, %v1810_v27  ;;  %v1811_v29 = vmul.f32 %v2553_v19, %v3295_v23 }
 0x18d   : > { %v1843_v22 = vmax.f32 %v1827_v39, 0.0  ;;  %v1828_v9 = vadd.f32 %v3300_v11, %v1805_v33  ;;  %v1851_v30 = vmax.f32 %v1835_v7, 0.0  ;;  %v1836_v38 = vadd.f32 %v3300_v11, %v1813_v35 }
 0x18e   : > { %v1841_v37 = vmax.f32 %v1825_v41, 0.0  ;;  %v1826_v57 = vadd.f32 %v3300_v11, %v1803_v36  ;;  %v1849_v42 = vmax.f32 %v1833_v8, 0.0  ;;  %v1834_v48 = vadd.f32 %v3300_v11, %v1811_v29 }
 0x18f   : > { %v1844_v46 = vmax.f32 %v1828_v9, 0.0  ;;  %v1852_v34 = vmax.f32 %v1836_v38, 0.0  ;;  %v2752_v56 = vmov (!%p2142_p6), 0.0  }
 0x190   : > { %v1842_v51 = vmax.f32 %v1826_v57, 0.0  ;;  %v1850_v15 = vmax.f32 %v1834_v48, 0.0  ;;  %1857 = vst [vmem:[%s2831_s8] sm:$0x1] (!%p2142_p6), %v2752_v56 }
 0x191 PF: > { %v1859_v23 = vadd.f32 %v1838_v63, %v1837_v44 }
 0x193   : > { %v1860_v58 = vadd.f32 %v1859_v23, %v1839_v18 }
 0x195   : > { %v1861_v21 = vadd.f32 %v1860_v58, %v1840_v54 }
 0x197   : > { %v1862_v59 = vadd.f32 %v1861_v21, %v1841_v37  ;;  %v1858_v63 = vld [vmem:[%s2831_s8] sm:$0x1] }
 0x199   : > { %v1863_v60 = vadd.f32 %v1862_v59, %v1842_v51 }
 0x19b   : > { %v1864_v1 = vadd.f32 %v1863_v60, %v1843_v22 }
 0x19d   : > { %v1865_v40 = vadd.f32 %v1864_v1, %v1844_v46 }
 0x19f   : > { %v1866_v55 = vadd.f32 %v1865_v40, %v1845_v45 }
 0x1a1   : > { %v1867_v11 = vadd.f32 %v1866_v55, %v1846_v0 }
 0x1a3   : > { %v1868_v52 = vadd.f32 %v1867_v11, %v1847_v61 }
 0x1a5   : > { %v1869_v49 = vadd.f32 %v1868_v52, %v1848_v26 }
 0x1a7   : > { %v1870_v3 = vadd.f32 %v1869_v49, %v1849_v42 }
 0x1a9   : > { %v1871_v5 = vadd.f32 %v1870_v3, %v1850_v15 }
 0x1ab   : > { %v1872_v53 = vadd.f32 %v1871_v5, %v1851_v30 }
 0x1ad   : > { %v1873_v6 = vadd.f32 %v1872_v53, %v1852_v34 }
 0x1af   : > { %v1874_v32 = vrot.slane %v1873_v6, 4 }
 0x1b1   : > { %v1875_v44 = vadd.f32 %v1874_v32, %v1873_v6 }
 0x1b3   : > { %v1876_v18 = vrot.slane %v1875_v44, 2 }
 0x1b5   : > { %v1877_v54 = vadd.f32 %v1876_v18, %v1875_v44 }
 0x1b7   : > { %v1878_v31 = vrot.slane %v1877_v54, 1 }
 0x1b9   : > { %v1879_v43 = vadd.f32 %v1878_v31, %v1877_v54 }
 0x1bb   : > { %v1880_v14 = vmul.f32 0.00390625, %v1879_v43 }
 0x1bd   : > { %v1881_v47 = vadd.f32 %v1880_v14, %v1858_v63 }
 0x1bf   : > { %1882 = vst [vmem:[%s2831_s8] sm:$0x1] %v1881_v47 }
 0x1c0 PF: > { %s14_s19 = sadd.s32 1, %s2750_s19   ;;  %s3379_s15 = smov %s2742_s17 }
 0x1c1   : > { %p11_p7 = scmp.ge.s32.totalorder %s14_s19, 6   ;;  %s3380_s16 = smov %s2746_s18 }
 0x1c2   : > { %s3381_s17 = smov %s3384_s20  ;;  %s3382_s18 = smov %s3388_s21 }
 0x1c3   :  { %13 = sbr.rel (!%p11_p7) target bundleno = 3 (0x3), region = 73 }

</bundles_post_ra>
